<compile_context>
chip_gen: v5e
topology: v5e:2x2
jax: 0.10.0
libtpu: 0.0.40
codegen_flags: <defaults>
</compile_context>

<pallas_src>
import jax
import jax.numpy as jnp
from jax.experimental import pallas as pl

# ----------------------------- model dims (small, synthetic) -----------------
B = 2        # batch (number of prompts)
S = 8        # context length
D = 32       # transformer width
H = 4        # attention heads
DH = D // H  # head dim
MLP = 4 * D  # mlp hidden
L = 2        # transformer layers
DOUT = 32    # text_projection output dim
EPS = 1e-5
NEG_INF = -1e30


# ----------------------------- shared math ------------------------------------
def _layernorm(x, w, b):
    mu = jnp.mean(x, axis=-1, keepdims=True)
    var = jnp.mean((x - mu) ** 2, axis=-1, keepdims=True)
    return (x - mu) * jax.lax.rsqrt(var + EPS) * w + b


# ----------------------------- fused kernel -----------------------------------
def text_encoder_kernel(eot_ref, prompts_ref, pos_ref,
                        vecs_ref, bqkv_ref, b1_ref,
                        wqkv_ref, wo_ref, w1_ref, w2_ref,
                        lnf_ref, proj_ref, out_ref):
    """Whole TextEncoder forward; every ref lives in VMEM for the full call."""
    # x = prompts + positional_embedding, flattened to (B*S, D) so each
    # projection / MLP matmul covers the whole batch at once.
    x = (prompts_ref[...] + pos_ref[...][None, :, :]).reshape(B * S, D)

    # Causal additive bias, built once and reused by every layer / head.
    row = jax.lax.broadcasted_iota(jnp.int32, (S, S), 0)
    col = jax.lax.broadcasted_iota(jnp.int32, (S, S), 1)
    causal_bias = jnp.where(col <= row, 0.0, NEG_INF).astype(jnp.float32)[None]

    for li in range(L):  # static loop: weights indexed at trace time
        vecs = vecs_ref[li]                            # (6, D) packed vectors
        ln1_w, ln1_b, bo = vecs[0], vecs[1], vecs[2]
        ln2_w, ln2_b, b2 = vecs[3], vecs[4], vecs[5]
        bqkv = bqkv_ref[li]                            # (3D,)  q-part pre-scaled
        b1 = b1_ref[li]                                # (MLP,)
        wo_l = wo_ref[li]                              # (D, D)  pre-transposed

        # ---- attention branch: x += out_proj(MHA(ln_1(x), causal_mask)) ----
        h = _layernorm(x, ln1_w, ln1_b)
        qkv = jnp.dot(h, wqkv_ref[li], preferred_element_type=jnp.float32) + bqkv
        qkv3 = qkv.reshape(B, S, 3 * D)

        attn_out = jnp.zeros((B * S, D), jnp.float32)
        for hi in range(H):  # static head loop; batched over B inside each dot
            qh = qkv3[:, :, hi * DH:(hi + 1) * DH]                 # scaled q
            kh = qkv3[:, :, D + hi * DH:D + (hi + 1) * DH]
            vh = qkv3[:, :, 2 * D + hi * DH:2 * D + (hi + 1) * DH]
            s = jnp.einsum('bqd,bkd->bqk', qh, kh,
                           preferred_element_type=jnp.float32) + causal_bias
            s = s - jnp.max(s, axis=-1, keepdims=True)
            p = jnp.exp(s)
            p = p * pl.reciprocal(jnp.sum(p, axis=-1, keepdims=True), approx=True)
            oh = jnp.einsum('bqk,bkd->bqd', p, vh,
                            preferred_element_type=jnp.float32)    # (B, S, DH)
            # Fold this head's output straight into the out-projection
            # (no lane-axis concatenate of head slices).
            attn_out = attn_out + jnp.dot(
                oh.reshape(B * S, DH), wo_l[hi * DH:(hi + 1) * DH, :],
                preferred_element_type=jnp.float32)
        x = x + attn_out + bo

        # ---- mlp branch: x += c_proj(QuickGELU(c_fc(ln_2(x)))) ----
        h = _layernorm(x, ln2_w, ln2_b)
        h1 = jnp.dot(h, w1_ref[li], preferred_element_type=jnp.float32) + b1
        h1 = h1 * jax.nn.sigmoid(1.702 * h1)            # QuickGELU (CLIP)
        x = x + jnp.dot(h1, w2_ref[li], preferred_element_type=jnp.float32) + b2

    # ---- EOT gather (in-kernel) + ln_final + text_projection ----
    # ln_final is per-token, so applying it only to the gathered rows is exact.
    x3 = x.reshape(B, S, D)
    pos_ids = jax.lax.broadcasted_iota(jnp.int32, (B, S), 1)
    onehot = (pos_ids == eot_ref[...]).astype(jnp.float32)       # (B, S)
    x_eot = jnp.sum(x3 * onehot[:, :, None], axis=1)             # (B, D)
    lnf = lnf_ref[...]
    h = _layernorm(x_eot, lnf[0], lnf[1])
    out_ref[...] = jnp.dot(h, proj_ref[...], preferred_element_type=jnp.float32)


# ----------------------------- wrapper -----------------------------------------
def text_encoder_forward(prompts, tokenized_prompts, kp):
    # argmax over token ids is plain-JAX glue; the gather itself is in-kernel.
    eot_idx = jnp.argmax(tokenized_prompts, axis=-1).astype(jnp.int32).reshape(B, 1)
    return pl.pallas_call(
        text_encoder_kernel,
        out_shape=jax.ShapeDtypeStruct((B, DOUT), jnp.float32),
    )(eot_idx, prompts, kp["pos"], kp["vecs"], kp["bqkv"], kp["b1"],
      kp["wqkv"], kp["wo"], kp["w1"], kp["w2"], kp["lnf"], kp["proj"])


# ----------------------------- parameters --------------------------------------
def init_raw_params(key):
    """Parameters in their natural PyTorch layout."""
    def nrm(k, shape, scale=0.02):
        return scale * jax.random.normal(k, shape, jnp.float32)

    keys = jax.random.split(key, 2 + L)
    raw = {
        "pos_emb": nrm(keys[0], (S, D)),
        "lnf_w": jnp.ones((D,), jnp.float32),
        "lnf_b": jnp.zeros((D,), jnp.float32),
        "text_projection": nrm(keys[1], (D, DOUT)),
        "layers": [],
    }
    for li in range(L):
        lk = jax.random.split(keys[2 + li], 6)
        raw["layers"].append(dict(
            ln1_w=jnp.ones((D,), jnp.float32),
            ln1_b=jnp.zeros((D,), jnp.float32),
            wqkv=nrm(lk[0], (3 * D, D)),    # attn.in_proj_weight
            bqkv=nrm(lk[1], (3 * D,)),      # attn.in_proj_bias
            wo=nrm(lk[2], (D, D)),          # attn.out_proj.weight
            bo=jnp.zeros((D,), jnp.float32),
            ln2_w=jnp.ones((D,), jnp.float32),
            ln2_b=jnp.zeros((D,), jnp.float32),
            w1=nrm(lk[3], (MLP, D)),        # mlp.c_fc.weight
            b1=nrm(lk[4], (MLP,)),          # mlp.c_fc.bias
            w2=nrm(lk[5], (D, MLP)),        # mlp.c_proj.weight
            b2=jnp.zeros((D,), jnp.float32),
        ))
    return raw


def prepare_params(raw):
    """One-time host-side layout transform (zero runtime cost):
       * pre-transpose nn.Linear weights so the kernel computes x @ W (no .T),
       * fold 1/sqrt(DH) into the q projection weights/bias (mathematically exact),
       * stack per-layer weights and pack small LN/bias vectors into few refs."""
    scale = 1.0 / (DH ** 0.5)
    wqkv, wo, w1, w2, vecs, bqkv, b1 = [], [], [], [], [], [], []
    for lp in raw["layers"]:
        wq = lp["wqkv"].T                       # (D, 3D)
        wq = wq.at[:, :D].multiply(scale)       # scale q columns
        bq = lp["bqkv"].at[:D].multiply(scale)  # scale q bias
        wqkv.append(wq)
        bqkv.append(bq)
        wo.append(lp["wo"].T)                   # (D, D)
        w1.append(lp["w1"].T)                   # (D, MLP)
        b1.append(lp["b1"])
        w2.append(lp["w2"].T)                   # (MLP, D)
        vecs.append(jnp.stack([lp["ln1_w"], lp["ln1_b"], lp["bo"],
                               lp["ln2_w"], lp["ln2_b"], lp["b2"]]))
    return {
        "pos": raw["pos_emb"],                              # (S, D)
        "vecs": jnp.stack(vecs),                            # (L, 6, D)
        "bqkv": jnp.stack(bqkv),                            # (L, 3D)
        "b1": jnp.stack(b1),                                # (L, MLP)
        "wqkv": jnp.stack(wqkv),                            # (L, D, 3D)
        "wo": jnp.stack(wo),                                # (L, D, D)
        "w1": jnp.stack(w1),                                # (L, D, MLP)
        "w2": jnp.stack(w2),                                # (L, MLP, D)
        "lnf": jnp.stack([raw["lnf_w"], raw["lnf_b"]]),     # (2, D)
        "proj": raw["text_projection"],                     # (D, DOUT)
    }


# ----------------------------- pure-JAX reference (PyTorch semantics) ----------
def reference_forward(prompts, tokenized_prompts, raw):
    x = prompts + raw["pos_emb"]
    mask = jnp.tril(jnp.ones((S, S), bool))
    for lp in raw["layers"]:
        h = _layernorm(x, lp["ln1_w"], lp["ln1_b"])
        qkv = h @ lp["wqkv"].T + lp["bqkv"]
        q, k, v = qkv[..., :D], qkv[..., D:2 * D], qkv[..., 2 * D:]
        q = q.reshape(B, S, H, DH).transpose(0, 2, 1, 3)
        k = k.reshape(B, S, H, DH).transpose(0, 2, 1, 3)
        v = v.reshape(B, S, H, DH).transpose(0, 2, 1, 3)
        s = jnp.einsum('bhqd,bhkd->bhqk', q, k) / (DH ** 0.5)
        s = jnp.where(mask, s, -jnp.inf)
        p = jax.nn.softmax(s, axis=-1)
        o = jnp.einsum('bhqk,bhkd->bhqd', p, v).transpose(0, 2, 1, 3).reshape(B, S, D)
        x = x + o @ lp["wo"].T + lp["bo"]
        h = _layernorm(x, lp["ln2_w"], lp["ln2_b"])
        h1 = h @ lp["w1"].T + lp["b1"]
        h1 = h1 * jax.nn.sigmoid(1.702 * h1)
        x = x + h1 @ lp["w2"].T + lp["b2"]
    x = _layernorm(x, raw["lnf_w"], raw["lnf_b"])
    eot = jnp.argmax(tokenized_prompts, axis=-1)
    return x[jnp.arange(B), eot] @ raw["text_projection"]


# ----------------------------- main ---------------------------------------------
if __name__ == "__main__":
    key = jax.random.PRNGKey(0)
    k_prompts, k_params = jax.random.split(key)

    prompts = jax.random.normal(k_prompts, (B, S, D), jnp.float32)
    # tokenized prompts: argmax(-1) gives the EOT position per prompt.
    tokenized_prompts = jnp.array(
        [[49406, 320, 1125, 539, 320, 49407, 0, 0],
         [49406, 320, 1125, 539, 1929, 320, 2368, 49407]], dtype=jnp.int32)

    raw = init_raw_params(k_params)
    kp = prepare_params(raw)

    out = text_encoder_forward(prompts, tokenized_prompts, kp)
    jax.block_until_ready(out)
    assert out.shape == (B, DOUT), out.shape
    assert bool(jnp.isfinite(out).all())

    # Loose sanity check vs. pure-JAX reference (tolerance covers the approx
    # reciprocal in the kernel softmax and MXU rounding differences).
    ref = reference_forward(prompts, tokenized_prompts, raw)
    err = float(jnp.max(jnp.abs(out - ref)))
    assert err < 2e-2, f"max abs error {err}"

    print("KERNEL_OK")
</pallas_src>

<mosaic_0001>
module attributes {stable_mosaic.version = 11 : i64} {
  func.func @text_encoder_kernel(%arg0: memref<2x1xi32, #tpu.memory_space<vmem>>, %arg1: memref<2x8x32xf32, #tpu.memory_space<vmem>>, %arg2: memref<8x32xf32, #tpu.memory_space<vmem>>, %arg3: memref<2x6x32xf32, #tpu.memory_space<vmem>>, %arg4: memref<2x96xf32, #tpu.memory_space<vmem>>, %arg5: memref<2x128xf32, #tpu.memory_space<vmem>>, %arg6: memref<2x32x96xf32, #tpu.memory_space<vmem>>, %arg7: memref<2x32x32xf32, #tpu.memory_space<vmem>>, %arg8: memref<2x32x128xf32, #tpu.memory_space<vmem>>, %arg9: memref<2x128x32xf32, #tpu.memory_space<vmem>>, %arg10: memref<2x32xf32, #tpu.memory_space<vmem>>, %arg11: memref<32x32xf32, #tpu.memory_space<vmem>>, %arg12: memref<2x32xf32, #tpu.memory_space<vmem>>) attributes {dimension_semantics = [], scalar_prefetch = 0 : i64, scratch_operands = 0 : i64, tpu.core_type = #tpu.core_type<tc>} {
    %c0 = arith.constant 0 : index
    %c0_0 = arith.constant 0 : index
    %c0_1 = arith.constant 0 : index
    %0 = vector.load %arg1[%c0, %c0_0, %c0_1] : memref<2x8x32xf32, #tpu.memory_space<vmem>>, vector<2x8x32xf32>
    %c0_2 = arith.constant 0 : index
    %c0_3 = arith.constant 0 : index
    %1 = vector.load %arg2[%c0_2, %c0_3] : memref<8x32xf32, #tpu.memory_space<vmem>>, vector<8x32xf32>
    %2 = vector.shape_cast %1 : vector<8x32xf32> to vector<1x8x32xf32>
    %3 = vector.broadcast %2 : vector<1x8x32xf32> to vector<2x8x32xf32>
    %4 = arith.addf %0, %3 : vector<2x8x32xf32>
    %5 = vector.shape_cast %4 : vector<2x8x32xf32> to vector<16x32xf32>
    %6 = tpu.iota {dimensions = array<i32: 0>} : vector<8x8xi32>
    %7 = tpu.iota {dimensions = array<i32: 1>} : vector<8x8xi32>
    %8 = arith.cmpi sle, %7, %6 : vector<8x8xi32>
    %cst = arith.constant 0.000000e+00 : f32
    %cst_4 = arith.constant -1.000000e+30 : f32
    %9 = vector.broadcast %cst : f32 to vector<8x8xf32>
    %10 = vector.broadcast %cst_4 : f32 to vector<8x8xf32>
    %11 = arith.select %8, %9, %10 : vector<8x8xi1>, vector<8x8xf32>
    %12 = vector.shape_cast %11 : vector<8x8xf32> to vector<1x8x8xf32>
    %c0_5 = arith.constant 0 : index
    %c0_6 = arith.constant 0 : index
    %c0_7 = arith.constant 0 : index
    %13 = vector.load %arg3[%c0_5, %c0_6, %c0_7] : memref<2x6x32xf32, #tpu.memory_space<vmem>>, vector<1x6x32xf32>
    %14 = vector.shape_cast %13 : vector<1x6x32xf32> to vector<6x32xf32>
    %15 = vector.extract_strided_slice %14 {offsets = [0, 0], sizes = [1, 32], strides = [1, 1]} : vector<6x32xf32> to vector<1x32xf32>
    %16 = vector.shape_cast %15 : vector<1x32xf32> to vector<32xf32>
    %17 = vector.extract_strided_slice %14 {offsets = [1, 0], sizes = [1, 32], strides = [1, 1]} : vector<6x32xf32> to vector<1x32xf32>
    %18 = vector.shape_cast %17 : vector<1x32xf32> to vector<32xf32>
    %19 = vector.extract_strided_slice %14 {offsets = [2, 0], sizes = [1, 32], strides = [1, 1]} : vector<6x32xf32> to vector<1x32xf32>
    %20 = vector.shape_cast %19 : vector<1x32xf32> to vector<32xf32>
    %21 = vector.extract_strided_slice %14 {offsets = [3, 0], sizes = [1, 32], strides = [1, 1]} : vector<6x32xf32> to vector<1x32xf32>
    %22 = vector.shape_cast %21 : vector<1x32xf32> to vector<32xf32>
    %23 = vector.extract_strided_slice %14 {offsets = [4, 0], sizes = [1, 32], strides = [1, 1]} : vector<6x32xf32> to vector<1x32xf32>
    %24 = vector.shape_cast %23 : vector<1x32xf32> to vector<32xf32>
    %25 = vector.extract_strided_slice %14 {offsets = [5, 0], sizes = [1, 32], strides = [1, 1]} : vector<6x32xf32> to vector<1x32xf32>
    %26 = vector.shape_cast %25 : vector<1x32xf32> to vector<32xf32>
    %c0_8 = arith.constant 0 : index
    %c0_9 = arith.constant 0 : index
    %27 = vector.load %arg4[%c0_8, %c0_9] : memref<2x96xf32, #tpu.memory_space<vmem>>, vector<1x96xf32>
    %28 = vector.shape_cast %27 : vector<1x96xf32> to vector<96xf32>
    %c0_10 = arith.constant 0 : index
    %c0_11 = arith.constant 0 : index
    %29 = vector.load %arg5[%c0_10, %c0_11] : memref<2x128xf32, #tpu.memory_space<vmem>>, vector<1x128xf32>
    %30 = vector.shape_cast %29 : vector<1x128xf32> to vector<128xf32>
    %c0_12 = arith.constant 0 : index
    %c0_13 = arith.constant 0 : index
    %c0_14 = arith.constant 0 : index
    %31 = vector.load %arg7[%c0_12, %c0_13, %c0_14] : memref<2x32x32xf32, #tpu.memory_space<vmem>>, vector<1x32x32xf32>
    %32 = vector.shape_cast %31 : vector<1x32x32xf32> to vector<32x32xf32>
    %cst_15 = arith.constant dense<0.000000e+00> : vector<16xf32>
    %33 = vector.multi_reduction <add>, %5, %cst_15 [1] : vector<16x32xf32> to vector<16xf32>
    %34 = vector.shape_cast %33 : vector<16xf32> to vector<16x1xf32>
    %cst_16 = arith.constant 3.200000e+01 : f32
    %35 = vector.broadcast %cst_16 : f32 to vector<16x1xf32>
    %36 = arith.divf %34, %35 : vector<16x1xf32>
    %37 = vector.broadcast %36 : vector<16x1xf32> to vector<16x32xf32>
    %38 = arith.subf %5, %37 : vector<16x32xf32>
    %39 = arith.mulf %38, %38 : vector<16x32xf32>
    %cst_17 = arith.constant dense<0.000000e+00> : vector<16xf32>
    %40 = vector.multi_reduction <add>, %39, %cst_17 [1] : vector<16x32xf32> to vector<16xf32>
    %41 = vector.shape_cast %40 : vector<16xf32> to vector<16x1xf32>
    %cst_18 = arith.constant 3.200000e+01 : f32
    %42 = vector.broadcast %cst_18 : f32 to vector<16x1xf32>
    %43 = arith.divf %41, %42 : vector<16x1xf32>
    %44 = vector.broadcast %36 : vector<16x1xf32> to vector<16x32xf32>
    %45 = arith.subf %5, %44 : vector<16x32xf32>
    %cst_19 = arith.constant 9.99999974E-6 : f32
    %46 = vector.broadcast %cst_19 : f32 to vector<16x1xf32>
    %47 = arith.addf %43, %46 : vector<16x1xf32>
    %48 = math.rsqrt %47 : vector<16x1xf32>
    %49 = vector.broadcast %48 : vector<16x1xf32> to vector<16x32xf32>
    %50 = arith.mulf %45, %49 : vector<16x32xf32>
    %51 = vector.shape_cast %16 : vector<32xf32> to vector<1x32xf32>
    %52 = vector.broadcast %51 : vector<1x32xf32> to vector<16x32xf32>
    %53 = arith.mulf %50, %52 : vector<16x32xf32>
    %54 = vector.shape_cast %18 : vector<32xf32> to vector<1x32xf32>
    %55 = vector.broadcast %54 : vector<1x32xf32> to vector<16x32xf32>
    %56 = arith.addf %53, %55 : vector<16x32xf32>
    %c0_20 = arith.constant 0 : index
    %c0_21 = arith.constant 0 : index
    %c0_22 = arith.constant 0 : index
    %57 = vector.load %arg6[%c0_20, %c0_21, %c0_22] : memref<2x32x96xf32, #tpu.memory_space<vmem>>, vector<1x32x96xf32>
    %58 = vector.shape_cast %57 : vector<1x32x96xf32> to vector<32x96xf32>
    %cst_23 = arith.constant dense<0.000000e+00> : vector<16x96xf32>
    %59 = tpu.matmul %56, %58, %cst_23 {dimension_numbers = #tpu.dot_dimension_numbers<[1], [0], [0], [1], [0, 0, 1, 1], [], []>} : vector<16x32xf32>, vector<32x96xf32>, vector<16x96xf32> -> vector<16x96xf32>
    %60 = vector.shape_cast %28 : vector<96xf32> to vector<1x96xf32>
    %61 = vector.broadcast %60 : vector<1x96xf32> to vector<16x96xf32>
    %62 = arith.addf %59, %61 : vector<16x96xf32>
    %63 = vector.shape_cast %62 : vector<16x96xf32> to vector<2x8x96xf32>
    %cst_24 = arith.constant 0.000000e+00 : f32
    %64 = vector.broadcast %cst_24 : f32 to vector<16x32xf32>
    %65 = vector.extract_strided_slice %63 {offsets = [0, 0, 0], sizes = [2, 8, 8], strides = [1, 1, 1]} : vector<2x8x96xf32> to vector<2x8x8xf32>
    %66 = vector.extract_strided_slice %63 {offsets = [0, 0, 32], sizes = [2, 8, 8], strides = [1, 1, 1]} : vector<2x8x96xf32> to vector<2x8x8xf32>
    %67 = vector.extract_strided_slice %63 {offsets = [0, 0, 64], sizes = [2, 8, 8], strides = [1, 1, 1]} : vector<2x8x96xf32> to vector<2x8x8xf32>
    "tpu.trace_start"() <{level = 10 : i32, message = "bqd,bkd->bqk"}> : () -> ()
    %cst_25 = arith.constant dense<0.000000e+00> : vector<2x8x8xf32>
    %68 = tpu.matmul %65, %66, %cst_25 {dimension_numbers = #tpu.dot_dimension_numbers<[2], [2], [1], [1], [0, 0, 0, 1, 1, 1], [0], [0]>} : vector<2x8x8xf32>, vector<2x8x8xf32>, vector<2x8x8xf32> -> vector<2x8x8xf32>
    "tpu.trace_stop"() : () -> ()
    %69 = vector.broadcast %12 : vector<1x8x8xf32> to vector<2x8x8xf32>
    %70 = arith.addf %68, %69 : vector<2x8x8xf32>
    %cst_26 = arith.constant dense<0xFF800000> : vector<2x8xf32>
    %71 = vector.multi_reduction <maximumf>, %70, %cst_26 [2] : vector<2x8x8xf32> to vector<2x8xf32>
    %72 = vector.shape_cast %71 : vector<2x8xf32> to vector<2x8x1xf32>
    %73 = vector.broadcast %72 : vector<2x8x1xf32> to vector<2x8x8xf32>
    %74 = arith.subf %70, %73 : vector<2x8x8xf32>
    %75 = math.exp %74 : vector<2x8x8xf32>
    %cst_27 = arith.constant dense<0.000000e+00> : vector<2x8xf32>
    %76 = vector.multi_reduction <add>, %75, %cst_27 [2] : vector<2x8x8xf32> to vector<2x8xf32>
    %77 = vector.shape_cast %76 : vector<2x8xf32> to vector<2x8x1xf32>
    %78 = tpu.reciprocal %77 {approx = true} : vector<2x8x1xf32> -> vector<2x8x1xf32>
    %79 = vector.broadcast %78 : vector<2x8x1xf32> to vector<2x8x8xf32>
    %80 = arith.mulf %75, %79 : vector<2x8x8xf32>
    "tpu.trace_start"() <{level = 10 : i32, message = "bqk,bkd->bqd"}> : () -> ()
    %cst_28 = arith.constant dense<0.000000e+00> : vector<2x8x8xf32>
    %81 = tpu.matmul %80, %67, %cst_28 {dimension_numbers = #tpu.dot_dimension_numbers<[2], [1], [1], [2], [0, 0, 0, 1, 1, 2], [0], [0]>} : vector<2x8x8xf32>, vector<2x8x8xf32>, vector<2x8x8xf32> -> vector<2x8x8xf32>
    "tpu.trace_stop"() : () -> ()
    %82 = vector.shape_cast %81 : vector<2x8x8xf32> to vector<16x8xf32>
    %83 = vector.extract_strided_slice %32 {offsets = [0, 0], sizes = [8, 32], strides = [1, 1]} : vector<32x32xf32> to vector<8x32xf32>
    %cst_29 = arith.constant dense<0.000000e+00> : vector<16x32xf32>
    %84 = tpu.matmul %82, %83, %cst_29 {dimension_numbers = #tpu.dot_dimension_numbers<[1], [0], [0], [1], [0, 0, 1, 1], [], []>} : vector<16x8xf32>, vector<8x32xf32>, vector<16x32xf32> -> vector<16x32xf32>
    %85 = arith.addf %64, %84 : vector<16x32xf32>
    %86 = vector.extract_strided_slice %63 {offsets = [0, 0, 8], sizes = [2, 8, 8], strides = [1, 1, 1]} : vector<2x8x96xf32> to vector<2x8x8xf32>
    %87 = vector.extract_strided_slice %63 {offsets = [0, 0, 40], sizes = [2, 8, 8], strides = [1, 1, 1]} : vector<2x8x96xf32> to vector<2x8x8xf32>
    %88 = vector.extract_strided_slice %63 {offsets = [0, 0, 72], sizes = [2, 8, 8], strides = [1, 1, 1]} : vector<2x8x96xf32> to vector<2x8x8xf32>
    "tpu.trace_start"() <{level = 10 : i32, message = "bqd,bkd->bqk"}> : () -> ()
    %cst_30 = arith.constant dense<0.000000e+00> : vector<2x8x8xf32>
    %89 = tpu.matmul %86, %87, %cst_30 {dimension_numbers = #tpu.dot_dimension_numbers<[2], [2], [1], [1], [0, 0, 0, 1, 1, 1], [0], [0]>} : vector<2x8x8xf32>, vector<2x8x8xf32>, vector<2x8x8xf32> -> vector<2x8x8xf32>
    "tpu.trace_stop"() : () -> ()
    %90 = vector.broadcast %12 : vector<1x8x8xf32> to vector<2x8x8xf32>
    %91 = arith.addf %89, %90 : vector<2x8x8xf32>
    %cst_31 = arith.constant dense<0xFF800000> : vector<2x8xf32>
    %92 = vector.multi_reduction <maximumf>, %91, %cst_31 [2] : vector<2x8x8xf32> to vector<2x8xf32>
    %93 = vector.shape_cast %92 : vector<2x8xf32> to vector<2x8x1xf32>
    %94 = vector.broadcast %93 : vector<2x8x1xf32> to vector<2x8x8xf32>
    %95 = arith.subf %91, %94 : vector<2x8x8xf32>
    %96 = math.exp %95 : vector<2x8x8xf32>
    %cst_32 = arith.constant dense<0.000000e+00> : vector<2x8xf32>
    %97 = vector.multi_reduction <add>, %96, %cst_32 [2] : vector<2x8x8xf32> to vector<2x8xf32>
    %98 = vector.shape_cast %97 : vector<2x8xf32> to vector<2x8x1xf32>
    %99 = tpu.reciprocal %98 {approx = true} : vector<2x8x1xf32> -> vector<2x8x1xf32>
    %100 = vector.broadcast %99 : vector<2x8x1xf32> to vector<2x8x8xf32>
    %101 = arith.mulf %96, %100 : vector<2x8x8xf32>
    "tpu.trace_start"() <{level = 10 : i32, message = "bqk,bkd->bqd"}> : () -> ()
    %cst_33 = arith.constant dense<0.000000e+00> : vector<2x8x8xf32>
    %102 = tpu.matmul %101, %88, %cst_33 {dimension_numbers = #tpu.dot_dimension_numbers<[2], [1], [1], [2], [0, 0, 0, 1, 1, 2], [0], [0]>} : vector<2x8x8xf32>, vector<2x8x8xf32>, vector<2x8x8xf32> -> vector<2x8x8xf32>
    "tpu.trace_stop"() : () -> ()
    %103 = vector.shape_cast %102 : vector<2x8x8xf32> to vector<16x8xf32>
    %104 = vector.extract_strided_slice %32 {offsets = [8, 0], sizes = [8, 32], strides = [1, 1]} : vector<32x32xf32> to vector<8x32xf32>
    %cst_34 = arith.constant dense<0.000000e+00> : vector<16x32xf32>
    %105 = tpu.matmul %103, %104, %cst_34 {dimension_numbers = #tpu.dot_dimension_numbers<[1], [0], [0], [1], [0, 0, 1, 1], [], []>} : vector<16x8xf32>, vector<8x32xf32>, vector<16x32xf32> -> vector<16x32xf32>
    %106 = arith.addf %85, %105 : vector<16x32xf32>
    %107 = vector.extract_strided_slice %63 {offsets = [0, 0, 16], sizes = [2, 8, 8], strides = [1, 1, 1]} : vector<2x8x96xf32> to vector<2x8x8xf32>
    %108 = vector.extract_strided_slice %63 {offsets = [0, 0, 48], sizes = [2, 8, 8], strides = [1, 1, 1]} : vector<2x8x96xf32> to vector<2x8x8xf32>
    %109 = vector.extract_strided_slice %63 {offsets = [0, 0, 80], sizes = [2, 8, 8], strides = [1, 1, 1]} : vector<2x8x96xf32> to vector<2x8x8xf32>
    "tpu.trace_start"() <{level = 10 : i32, message = "bqd,bkd->bqk"}> : () -> ()
    %cst_35 = arith.constant dense<0.000000e+00> : vector<2x8x8xf32>
    %110 = tpu.matmul %107, %108, %cst_35 {dimension_numbers = #tpu.dot_dimension_numbers<[2], [2], [1], [1], [0, 0, 0, 1, 1, 1], [0], [0]>} : vector<2x8x8xf32>, vector<2x8x8xf32>, vector<2x8x8xf32> -> vector<2x8x8xf32>
    "tpu.trace_stop"() : () -> ()
    %111 = vector.broadcast %12 : vector<1x8x8xf32> to vector<2x8x8xf32>
    %112 = arith.addf %110, %111 : vector<2x8x8xf32>
    %cst_36 = arith.constant dense<0xFF800000> : vector<2x8xf32>
    %113 = vector.multi_reduction <maximumf>, %112, %cst_36 [2] : vector<2x8x8xf32> to vector<2x8xf32>
    %114 = vector.shape_cast %113 : vector<2x8xf32> to vector<2x8x1xf32>
    %115 = vector.broadcast %114 : vector<2x8x1xf32> to vector<2x8x8xf32>
    %116 = arith.subf %112, %115 : vector<2x8x8xf32>
    %117 = math.exp %116 : vector<2x8x8xf32>
    %cst_37 = arith.constant dense<0.000000e+00> : vector<2x8xf32>
    %118 = vector.multi_reduction <add>, %117, %cst_37 [2] : vector<2x8x8xf32> to vector<2x8xf32>
    %119 = vector.shape_cast %118 : vector<2x8xf32> to vector<2x8x1xf32>
    %120 = tpu.reciprocal %119 {approx = true} : vector<2x8x1xf32> -> vector<2x8x1xf32>
    %121 = vector.broadcast %120 : vector<2x8x1xf32> to vector<2x8x8xf32>
    %122 = arith.mulf %117, %121 : vector<2x8x8xf32>
    "tpu.trace_start"() <{level = 10 : i32, message = "bqk,bkd->bqd"}> : () -> ()
    %cst_38 = arith.constant dense<0.000000e+00> : vector<2x8x8xf32>
    %123 = tpu.matmul %122, %109, %cst_38 {dimension_numbers = #tpu.dot_dimension_numbers<[2], [1], [1], [2], [0, 0, 0, 1, 1, 2], [0], [0]>} : vector<2x8x8xf32>, vector<2x8x8xf32>, vector<2x8x8xf32> -> vector<2x8x8xf32>
    "tpu.trace_stop"() : () -> ()
    %124 = vector.shape_cast %123 : vector<2x8x8xf32> to vector<16x8xf32>
    %125 = vector.extract_strided_slice %32 {offsets = [16, 0], sizes = [8, 32], strides = [1, 1]} : vector<32x32xf32> to vector<8x32xf32>
    %cst_39 = arith.constant dense<0.000000e+00> : vector<16x32xf32>
    %126 = tpu.matmul %124, %125, %cst_39 {dimension_numbers = #tpu.dot_dimension_numbers<[1], [0], [0], [1], [0, 0, 1, 1], [], []>} : vector<16x8xf32>, vector<8x32xf32>, vector<16x32xf32> -> vector<16x32xf32>
    %127 = arith.addf %106, %126 : vector<16x32xf32>
    %128 = vector.extract_strided_slice %63 {offsets = [0, 0, 24], sizes = [2, 8, 8], strides = [1, 1, 1]} : vector<2x8x96xf32> to vector<2x8x8xf32>
    %129 = vector.extract_strided_slice %63 {offsets = [0, 0, 56], sizes = [2, 8, 8], strides = [1, 1, 1]} : vector<2x8x96xf32> to vector<2x8x8xf32>
    %130 = vector.extract_strided_slice %63 {offsets = [0, 0, 88], sizes = [2, 8, 8], strides = [1, 1, 1]} : vector<2x8x96xf32> to vector<2x8x8xf32>
    "tpu.trace_start"() <{level = 10 : i32, message = "bqd,bkd->bqk"}> : () -> ()
    %cst_40 = arith.constant dense<0.000000e+00> : vector<2x8x8xf32>
    %131 = tpu.matmul %128, %129, %cst_40 {dimension_numbers = #tpu.dot_dimension_numbers<[2], [2], [1], [1], [0, 0, 0, 1, 1, 1], [0], [0]>} : vector<2x8x8xf32>, vector<2x8x8xf32>, vector<2x8x8xf32> -> vector<2x8x8xf32>
    "tpu.trace_stop"() : () -> ()
    %132 = vector.broadcast %12 : vector<1x8x8xf32> to vector<2x8x8xf32>
    %133 = arith.addf %131, %132 : vector<2x8x8xf32>
    %cst_41 = arith.constant dense<0xFF800000> : vector<2x8xf32>
    %134 = vector.multi_reduction <maximumf>, %133, %cst_41 [2] : vector<2x8x8xf32> to vector<2x8xf32>
    %135 = vector.shape_cast %134 : vector<2x8xf32> to vector<2x8x1xf32>
    %136 = vector.broadcast %135 : vector<2x8x1xf32> to vector<2x8x8xf32>
    %137 = arith.subf %133, %136 : vector<2x8x8xf32>
    %138 = math.exp %137 : vector<2x8x8xf32>
    %cst_42 = arith.constant dense<0.000000e+00> : vector<2x8xf32>
    %139 = vector.multi_reduction <add>, %138, %cst_42 [2] : vector<2x8x8xf32> to vector<2x8xf32>
    %140 = vector.shape_cast %139 : vector<2x8xf32> to vector<2x8x1xf32>
    %141 = tpu.reciprocal %140 {approx = true} : vector<2x8x1xf32> -> vector<2x8x1xf32>
    %142 = vector.broadcast %141 : vector<2x8x1xf32> to vector<2x8x8xf32>
    %143 = arith.mulf %138, %142 : vector<2x8x8xf32>
    "tpu.trace_start"() <{level = 10 : i32, message = "bqk,bkd->bqd"}> : () -> ()
    %cst_43 = arith.constant dense<0.000000e+00> : vector<2x8x8xf32>
    %144 = tpu.matmul %143, %130, %cst_43 {dimension_numbers = #tpu.dot_dimension_numbers<[2], [1], [1], [2], [0, 0, 0, 1, 1, 2], [0], [0]>} : vector<2x8x8xf32>, vector<2x8x8xf32>, vector<2x8x8xf32> -> vector<2x8x8xf32>
    "tpu.trace_stop"() : () -> ()
    %145 = vector.shape_cast %144 : vector<2x8x8xf32> to vector<16x8xf32>
    %146 = vector.extract_strided_slice %32 {offsets = [24, 0], sizes = [8, 32], strides = [1, 1]} : vector<32x32xf32> to vector<8x32xf32>
    %cst_44 = arith.constant dense<0.000000e+00> : vector<16x32xf32>
    %147 = tpu.matmul %145, %146, %cst_44 {dimension_numbers = #tpu.dot_dimension_numbers<[1], [0], [0], [1], [0, 0, 1, 1], [], []>} : vector<16x8xf32>, vector<8x32xf32>, vector<16x32xf32> -> vector<16x32xf32>
    %148 = arith.addf %127, %147 : vector<16x32xf32>
    %149 = arith.addf %5, %148 : vector<16x32xf32>
    %150 = vector.shape_cast %20 : vector<32xf32> to vector<1x32xf32>
    %151 = vector.broadcast %150 : vector<1x32xf32> to vector<16x32xf32>
    %152 = arith.addf %149, %151 : vector<16x32xf32>
    %cst_45 = arith.constant dense<0.000000e+00> : vector<16xf32>
    %153 = vector.multi_reduction <add>, %152, %cst_45 [1] : vector<16x32xf32> to vector<16xf32>
    %154 = vector.shape_cast %153 : vector<16xf32> to vector<16x1xf32>
    %cst_46 = arith.constant 3.200000e+01 : f32
    %155 = vector.broadcast %cst_46 : f32 to vector<16x1xf32>
    %156 = arith.divf %154, %155 : vector<16x1xf32>
    %157 = vector.broadcast %156 : vector<16x1xf32> to vector<16x32xf32>
    %158 = arith.subf %152, %157 : vector<16x32xf32>
    %159 = arith.mulf %158, %158 : vector<16x32xf32>
    %cst_47 = arith.constant dense<0.000000e+00> : vector<16xf32>
    %160 = vector.multi_reduction <add>, %159, %cst_47 [1] : vector<16x32xf32> to vector<16xf32>
    %161 = vector.shape_cast %160 : vector<16xf32> to vector<16x1xf32>
    %cst_48 = arith.constant 3.200000e+01 : f32
    %162 = vector.broadcast %cst_48 : f32 to vector<16x1xf32>
    %163 = arith.divf %161, %162 : vector<16x1xf32>
    %164 = vector.broadcast %156 : vector<16x1xf32> to vector<16x32xf32>
    %165 = arith.subf %152, %164 : vector<16x32xf32>
    %cst_49 = arith.constant 9.99999974E-6 : f32
    %166 = vector.broadcast %cst_49 : f32 to vector<16x1xf32>
    %167 = arith.addf %163, %166 : vector<16x1xf32>
    %168 = math.rsqrt %167 : vector<16x1xf32>
    %169 = vector.broadcast %168 : vector<16x1xf32> to vector<16x32xf32>
    %170 = arith.mulf %165, %169 : vector<16x32xf32>
    %171 = vector.shape_cast %22 : vector<32xf32> to vector<1x32xf32>
    %172 = vector.broadcast %171 : vector<1x32xf32> to vector<16x32xf32>
    %173 = arith.mulf %170, %172 : vector<16x32xf32>
    %174 = vector.shape_cast %24 : vector<32xf32> to vector<1x32xf32>
    %175 = vector.broadcast %174 : vector<1x32xf32> to vector<16x32xf32>
    %176 = arith.addf %173, %175 : vector<16x32xf32>
    %c0_50 = arith.constant 0 : index
    %c0_51 = arith.constant 0 : index
    %c0_52 = arith.constant 0 : index
    %177 = vector.load %arg8[%c0_50, %c0_51, %c0_52] : memref<2x32x128xf32, #tpu.memory_space<vmem>>, vector<1x32x128xf32>
    %178 = vector.shape_cast %177 : vector<1x32x128xf32> to vector<32x128xf32>
    %cst_53 = arith.constant dense<0.000000e+00> : vector<16x128xf32>
    %179 = tpu.matmul %176, %178, %cst_53 {dimension_numbers = #tpu.dot_dimension_numbers<[1], [0], [0], [1], [0, 0, 1, 1], [], []>} : vector<16x32xf32>, vector<32x128xf32>, vector<16x128xf32> -> vector<16x128xf32>
    %180 = vector.shape_cast %30 : vector<128xf32> to vector<1x128xf32>
    %181 = vector.broadcast %180 : vector<1x128xf32> to vector<16x128xf32>
    %182 = arith.addf %179, %181 : vector<16x128xf32>
    %cst_54 = arith.constant 1.702000e+00 : f32
    %183 = vector.broadcast %cst_54 : f32 to vector<16x128xf32>
    %184 = arith.mulf %183, %182 : vector<16x128xf32>
    %185 = arith.negf %184 : vector<16x128xf32>
    %186 = math.exp %185 : vector<16x128xf32>
    %cst_55 = arith.constant 1.000000e+00 : f32
    %187 = vector.broadcast %cst_55 : f32 to vector<16x128xf32>
    %188 = arith.addf %187, %186 : vector<16x128xf32>
    %189 = arith.divf %187, %188 : vector<16x128xf32>
    %190 = arith.mulf %182, %189 : vector<16x128xf32>
    %c0_56 = arith.constant 0 : index
    %c0_57 = arith.constant 0 : index
    %c0_58 = arith.constant 0 : index
    %191 = vector.load %arg9[%c0_56, %c0_57, %c0_58] : memref<2x128x32xf32, #tpu.memory_space<vmem>>, vector<1x128x32xf32>
    %192 = vector.shape_cast %191 : vector<1x128x32xf32> to vector<128x32xf32>
    %cst_59 = arith.constant dense<0.000000e+00> : vector<16x32xf32>
    %193 = tpu.matmul %190, %192, %cst_59 {dimension_numbers = #tpu.dot_dimension_numbers<[1], [0], [0], [1], [0, 0, 1, 1], [], []>} : vector<16x128xf32>, vector<128x32xf32>, vector<16x32xf32> -> vector<16x32xf32>
    %194 = arith.addf %152, %193 : vector<16x32xf32>
    %195 = vector.shape_cast %26 : vector<32xf32> to vector<1x32xf32>
    %196 = vector.broadcast %195 : vector<1x32xf32> to vector<16x32xf32>
    %197 = arith.addf %194, %196 : vector<16x32xf32>
    %c1 = arith.constant 1 : index
    %c0_60 = arith.constant 0 : index
    %c0_61 = arith.constant 0 : index
    %198 = vector.load %arg3[%c1, %c0_60, %c0_61] : memref<2x6x32xf32, #tpu.memory_space<vmem>>, vector<1x6x32xf32>
    %199 = vector.shape_cast %198 : vector<1x6x32xf32> to vector<6x32xf32>
    %200 = vector.extract_strided_slice %199 {offsets = [0, 0], sizes = [1, 32], strides = [1, 1]} : vector<6x32xf32> to vector<1x32xf32>
    %201 = vector.shape_cast %200 : vector<1x32xf32> to vector<32xf32>
    %202 = vector.extract_strided_slice %199 {offsets = [1, 0], sizes = [1, 32], strides = [1, 1]} : vector<6x32xf32> to vector<1x32xf32>
    %203 = vector.shape_cast %202 : vector<1x32xf32> to vector<32xf32>
    %204 = vector.extract_strided_slice %199 {offsets = [2, 0], sizes = [1, 32], strides = [1, 1]} : vector<6x32xf32> to vector<1x32xf32>
    %205 = vector.shape_cast %204 : vector<1x32xf32> to vector<32xf32>
    %206 = vector.extract_strided_slice %199 {offsets = [3, 0], sizes = [1, 32], strides = [1, 1]} : vector<6x32xf32> to vector<1x32xf32>
    %207 = vector.shape_cast %206 : vector<1x32xf32> to vector<32xf32>
    %208 = vector.extract_strided_slice %199 {offsets = [4, 0], sizes = [1, 32], strides = [1, 1]} : vector<6x32xf32> to vector<1x32xf32>
    %209 = vector.shape_cast %208 : vector<1x32xf32> to vector<32xf32>
    %210 = vector.extract_strided_slice %199 {offsets = [5, 0], sizes = [1, 32], strides = [1, 1]} : vector<6x32xf32> to vector<1x32xf32>
    %211 = vector.shape_cast %210 : vector<1x32xf32> to vector<32xf32>
    %c1_62 = arith.constant 1 : index
    %c0_63 = arith.constant 0 : index
    %212 = vector.load %arg4[%c1_62, %c0_63] : memref<2x96xf32, #tpu.memory_space<vmem>>, vector<1x96xf32>
    %213 = vector.shape_cast %212 : vector<1x96xf32> to vector<96xf32>
    %c1_64 = arith.constant 1 : index
    %c0_65 = arith.constant 0 : index
    %214 = vector.load %arg5[%c1_64, %c0_65] : memref<2x128xf32, #tpu.memory_space<vmem>>, vector<1x128xf32>
    %215 = vector.shape_cast %214 : vector<1x128xf32> to vector<128xf32>
    %c1_66 = arith.constant 1 : index
    %c0_67 = arith.constant 0 : index
    %c0_68 = arith.constant 0 : index
    %216 = vector.load %arg7[%c1_66, %c0_67, %c0_68] : memref<2x32x32xf32, #tpu.memory_space<vmem>>, vector<1x32x32xf32>
    %217 = vector.shape_cast %216 : vector<1x32x32xf32> to vector<32x32xf32>
    %cst_69 = arith.constant dense<0.000000e+00> : vector<16xf32>
    %218 = vector.multi_reduction <add>, %197, %cst_69 [1] : vector<16x32xf32> to vector<16xf32>
    %219 = vector.shape_cast %218 : vector<16xf32> to vector<16x1xf32>
    %cst_70 = arith.constant 3.200000e+01 : f32
    %220 = vector.broadcast %cst_70 : f32 to vector<16x1xf32>
    %221 = arith.divf %219, %220 : vector<16x1xf32>
    %222 = vector.broadcast %221 : vector<16x1xf32> to vector<16x32xf32>
    %223 = arith.subf %197, %222 : vector<16x32xf32>
    %224 = arith.mulf %223, %223 : vector<16x32xf32>
    %cst_71 = arith.constant dense<0.000000e+00> : vector<16xf32>
    %225 = vector.multi_reduction <add>, %224, %cst_71 [1] : vector<16x32xf32> to vector<16xf32>
    %226 = vector.shape_cast %225 : vector<16xf32> to vector<16x1xf32>
    %cst_72 = arith.constant 3.200000e+01 : f32
    %227 = vector.broadcast %cst_72 : f32 to vector<16x1xf32>
    %228 = arith.divf %226, %227 : vector<16x1xf32>
    %229 = vector.broadcast %221 : vector<16x1xf32> to vector<16x32xf32>
    %230 = arith.subf %197, %229 : vector<16x32xf32>
    %cst_73 = arith.constant 9.99999974E-6 : f32
    %231 = vector.broadcast %cst_73 : f32 to vector<16x1xf32>
    %232 = arith.addf %228, %231 : vector<16x1xf32>
    %233 = math.rsqrt %232 : vector<16x1xf32>
    %234 = vector.broadcast %233 : vector<16x1xf32> to vector<16x32xf32>
    %235 = arith.mulf %230, %234 : vector<16x32xf32>
    %236 = vector.shape_cast %201 : vector<32xf32> to vector<1x32xf32>
    %237 = vector.broadcast %236 : vector<1x32xf32> to vector<16x32xf32>
    %238 = arith.mulf %235, %237 : vector<16x32xf32>
    %239 = vector.shape_cast %203 : vector<32xf32> to vector<1x32xf32>
    %240 = vector.broadcast %239 : vector<1x32xf32> to vector<16x32xf32>
    %241 = arith.addf %238, %240 : vector<16x32xf32>
    %c1_74 = arith.constant 1 : index
    %c0_75 = arith.constant 0 : index
    %c0_76 = arith.constant 0 : index
    %242 = vector.load %arg6[%c1_74, %c0_75, %c0_76] : memref<2x32x96xf32, #tpu.memory_space<vmem>>, vector<1x32x96xf32>
    %243 = vector.shape_cast %242 : vector<1x32x96xf32> to vector<32x96xf32>
    %cst_77 = arith.constant dense<0.000000e+00> : vector<16x96xf32>
    %244 = tpu.matmul %241, %243, %cst_77 {dimension_numbers = #tpu.dot_dimension_numbers<[1], [0], [0], [1], [0, 0, 1, 1], [], []>} : vector<16x32xf32>, vector<32x96xf32>, vector<16x96xf32> -> vector<16x96xf32>
    %245 = vector.shape_cast %213 : vector<96xf32> to vector<1x96xf32>
    %246 = vector.broadcast %245 : vector<1x96xf32> to vector<16x96xf32>
    %247 = arith.addf %244, %246 : vector<16x96xf32>
    %248 = vector.shape_cast %247 : vector<16x96xf32> to vector<2x8x96xf32>
    %cst_78 = arith.constant 0.000000e+00 : f32
    %249 = vector.broadcast %cst_78 : f32 to vector<16x32xf32>
    %250 = vector.extract_strided_slice %248 {offsets = [0, 0, 0], sizes = [2, 8, 8], strides = [1, 1, 1]} : vector<2x8x96xf32> to vector<2x8x8xf32>
    %251 = vector.extract_strided_slice %248 {offsets = [0, 0, 32], sizes = [2, 8, 8], strides = [1, 1, 1]} : vector<2x8x96xf32> to vector<2x8x8xf32>
    %252 = vector.extract_strided_slice %248 {offsets = [0, 0, 64], sizes = [2, 8, 8], strides = [1, 1, 1]} : vector<2x8x96xf32> to vector<2x8x8xf32>
    "tpu.trace_start"() <{level = 10 : i32, message = "bqd,bkd->bqk"}> : () -> ()
    %cst_79 = arith.constant dense<0.000000e+00> : vector<2x8x8xf32>
    %253 = tpu.matmul %250, %251, %cst_79 {dimension_numbers = #tpu.dot_dimension_numbers<[2], [2], [1], [1], [0, 0, 0, 1, 1, 1], [0], [0]>} : vector<2x8x8xf32>, vector<2x8x8xf32>, vector<2x8x8xf32> -> vector<2x8x8xf32>
    "tpu.trace_stop"() : () -> ()
    %254 = vector.broadcast %12 : vector<1x8x8xf32> to vector<2x8x8xf32>
    %255 = arith.addf %253, %254 : vector<2x8x8xf32>
    %cst_80 = arith.constant dense<0xFF800000> : vector<2x8xf32>
    %256 = vector.multi_reduction <maximumf>, %255, %cst_80 [2] : vector<2x8x8xf32> to vector<2x8xf32>
    %257 = vector.shape_cast %256 : vector<2x8xf32> to vector<2x8x1xf32>
    %258 = vector.broadcast %257 : vector<2x8x1xf32> to vector<2x8x8xf32>
    %259 = arith.subf %255, %258 : vector<2x8x8xf32>
    %260 = math.exp %259 : vector<2x8x8xf32>
    %cst_81 = arith.constant dense<0.000000e+00> : vector<2x8xf32>
    %261 = vector.multi_reduction <add>, %260, %cst_81 [2] : vector<2x8x8xf32> to vector<2x8xf32>
    %262 = vector.shape_cast %261 : vector<2x8xf32> to vector<2x8x1xf32>
    %263 = tpu.reciprocal %262 {approx = true} : vector<2x8x1xf32> -> vector<2x8x1xf32>
    %264 = vector.broadcast %263 : vector<2x8x1xf32> to vector<2x8x8xf32>
    %265 = arith.mulf %260, %264 : vector<2x8x8xf32>
    "tpu.trace_start"() <{level = 10 : i32, message = "bqk,bkd->bqd"}> : () -> ()
    %cst_82 = arith.constant dense<0.000000e+00> : vector<2x8x8xf32>
    %266 = tpu.matmul %265, %252, %cst_82 {dimension_numbers = #tpu.dot_dimension_numbers<[2], [1], [1], [2], [0, 0, 0, 1, 1, 2], [0], [0]>} : vector<2x8x8xf32>, vector<2x8x8xf32>, vector<2x8x8xf32> -> vector<2x8x8xf32>
    "tpu.trace_stop"() : () -> ()
    %267 = vector.shape_cast %266 : vector<2x8x8xf32> to vector<16x8xf32>
    %268 = vector.extract_strided_slice %217 {offsets = [0, 0], sizes = [8, 32], strides = [1, 1]} : vector<32x32xf32> to vector<8x32xf32>
    %cst_83 = arith.constant dense<0.000000e+00> : vector<16x32xf32>
    %269 = tpu.matmul %267, %268, %cst_83 {dimension_numbers = #tpu.dot_dimension_numbers<[1], [0], [0], [1], [0, 0, 1, 1], [], []>} : vector<16x8xf32>, vector<8x32xf32>, vector<16x32xf32> -> vector<16x32xf32>
    %270 = arith.addf %249, %269 : vector<16x32xf32>
    %271 = vector.extract_strided_slice %248 {offsets = [0, 0, 8], sizes = [2, 8, 8], strides = [1, 1, 1]} : vector<2x8x96xf32> to vector<2x8x8xf32>
    %272 = vector.extract_strided_slice %248 {offsets = [0, 0, 40], sizes = [2, 8, 8], strides = [1, 1, 1]} : vector<2x8x96xf32> to vector<2x8x8xf32>
    %273 = vector.extract_strided_slice %248 {offsets = [0, 0, 72], sizes = [2, 8, 8], strides = [1, 1, 1]} : vector<2x8x96xf32> to vector<2x8x8xf32>
    "tpu.trace_start"() <{level = 10 : i32, message = "bqd,bkd->bqk"}> : () -> ()
    %cst_84 = arith.constant dense<0.000000e+00> : vector<2x8x8xf32>
    %274 = tpu.matmul %271, %272, %cst_84 {dimension_numbers = #tpu.dot_dimension_numbers<[2], [2], [1], [1], [0, 0, 0, 1, 1, 1], [0], [0]>} : vector<2x8x8xf32>, vector<2x8x8xf32>, vector<2x8x8xf32> -> vector<2x8x8xf32>
    "tpu.trace_stop"() : () -> ()
    %275 = vector.broadcast %12 : vector<1x8x8xf32> to vector<2x8x8xf32>
    %276 = arith.addf %274, %275 : vector<2x8x8xf32>
    %cst_85 = arith.constant dense<0xFF800000> : vector<2x8xf32>
    %277 = vector.multi_reduction <maximumf>, %276, %cst_85 [2] : vector<2x8x8xf32> to vector<2x8xf32>
    %278 = vector.shape_cast %277 : vector<2x8xf32> to vector<2x8x1xf32>
    %279 = vector.broadcast %278 : vector<2x8x1xf32> to vector<2x8x8xf32>
    %280 = arith.subf %276, %279 : vector<2x8x8xf32>
    %281 = math.exp %280 : vector<2x8x8xf32>
    %cst_86 = arith.constant dense<0.000000e+00> : vector<2x8xf32>
    %282 = vector.multi_reduction <add>, %281, %cst_86 [2] : vector<2x8x8xf32> to vector<2x8xf32>
    %283 = vector.shape_cast %282 : vector<2x8xf32> to vector<2x8x1xf32>
    %284 = tpu.reciprocal %283 {approx = true} : vector<2x8x1xf32> -> vector<2x8x1xf32>
    %285 = vector.broadcast %284 : vector<2x8x1xf32> to vector<2x8x8xf32>
    %286 = arith.mulf %281, %285 : vector<2x8x8xf32>
    "tpu.trace_start"() <{level = 10 : i32, message = "bqk,bkd->bqd"}> : () -> ()
    %cst_87 = arith.constant dense<0.000000e+00> : vector<2x8x8xf32>
    %287 = tpu.matmul %286, %273, %cst_87 {dimension_numbers = #tpu.dot_dimension_numbers<[2], [1], [1], [2], [0, 0, 0, 1, 1, 2], [0], [0]>} : vector<2x8x8xf32>, vector<2x8x8xf32>, vector<2x8x8xf32> -> vector<2x8x8xf32>
    "tpu.trace_stop"() : () -> ()
    %288 = vector.shape_cast %287 : vector<2x8x8xf32> to vector<16x8xf32>
    %289 = vector.extract_strided_slice %217 {offsets = [8, 0], sizes = [8, 32], strides = [1, 1]} : vector<32x32xf32> to vector<8x32xf32>
    %cst_88 = arith.constant dense<0.000000e+00> : vector<16x32xf32>
    %290 = tpu.matmul %288, %289, %cst_88 {dimension_numbers = #tpu.dot_dimension_numbers<[1], [0], [0], [1], [0, 0, 1, 1], [], []>} : vector<16x8xf32>, vector<8x32xf32>, vector<16x32xf32> -> vector<16x32xf32>
    %291 = arith.addf %270, %290 : vector<16x32xf32>
    %292 = vector.extract_strided_slice %248 {offsets = [0, 0, 16], sizes = [2, 8, 8], strides = [1, 1, 1]} : vector<2x8x96xf32> to vector<2x8x8xf32>
    %293 = vector.extract_strided_slice %248 {offsets = [0, 0, 48], sizes = [2, 8, 8], strides = [1, 1, 1]} : vector<2x8x96xf32> to vector<2x8x8xf32>
    %294 = vector.extract_strided_slice %248 {offsets = [0, 0, 80], sizes = [2, 8, 8], strides = [1, 1, 1]} : vector<2x8x96xf32> to vector<2x8x8xf32>
    "tpu.trace_start"() <{level = 10 : i32, message = "bqd,bkd->bqk"}> : () -> ()
    %cst_89 = arith.constant dense<0.000000e+00> : vector<2x8x8xf32>
    %295 = tpu.matmul %292, %293, %cst_89 {dimension_numbers = #tpu.dot_dimension_numbers<[2], [2], [1], [1], [0, 0, 0, 1, 1, 1], [0], [0]>} : vector<2x8x8xf32>, vector<2x8x8xf32>, vector<2x8x8xf32> -> vector<2x8x8xf32>
    "tpu.trace_stop"() : () -> ()
    %296 = vector.broadcast %12 : vector<1x8x8xf32> to vector<2x8x8xf32>
    %297 = arith.addf %295, %296 : vector<2x8x8xf32>
    %cst_90 = arith.constant dense<0xFF800000> : vector<2x8xf32>
    %298 = vector.multi_reduction <maximumf>, %297, %cst_90 [2] : vector<2x8x8xf32> to vector<2x8xf32>
    %299 = vector.shape_cast %298 : vector<2x8xf32> to vector<2x8x1xf32>
    %300 = vector.broadcast %299 : vector<2x8x1xf32> to vector<2x8x8xf32>
    %301 = arith.subf %297, %300 : vector<2x8x8xf32>
    %302 = math.exp %301 : vector<2x8x8xf32>
    %cst_91 = arith.constant dense<0.000000e+00> : vector<2x8xf32>
    %303 = vector.multi_reduction <add>, %302, %cst_91 [2] : vector<2x8x8xf32> to vector<2x8xf32>
    %304 = vector.shape_cast %303 : vector<2x8xf32> to vector<2x8x1xf32>
    %305 = tpu.reciprocal %304 {approx = true} : vector<2x8x1xf32> -> vector<2x8x1xf32>
    %306 = vector.broadcast %305 : vector<2x8x1xf32> to vector<2x8x8xf32>
    %307 = arith.mulf %302, %306 : vector<2x8x8xf32>
    "tpu.trace_start"() <{level = 10 : i32, message = "bqk,bkd->bqd"}> : () -> ()
    %cst_92 = arith.constant dense<0.000000e+00> : vector<2x8x8xf32>
    %308 = tpu.matmul %307, %294, %cst_92 {dimension_numbers = #tpu.dot_dimension_numbers<[2], [1], [1], [2], [0, 0, 0, 1, 1, 2], [0], [0]>} : vector<2x8x8xf32>, vector<2x8x8xf32>, vector<2x8x8xf32> -> vector<2x8x8xf32>
    "tpu.trace_stop"() : () -> ()
    %309 = vector.shape_cast %308 : vector<2x8x8xf32> to vector<16x8xf32>
    %310 = vector.extract_strided_slice %217 {offsets = [16, 0], sizes = [8, 32], strides = [1, 1]} : vector<32x32xf32> to vector<8x32xf32>
    %cst_93 = arith.constant dense<0.000000e+00> : vector<16x32xf32>
    %311 = tpu.matmul %309, %310, %cst_93 {dimension_numbers = #tpu.dot_dimension_numbers<[1], [0], [0], [1], [0, 0, 1, 1], [], []>} : vector<16x8xf32>, vector<8x32xf32>, vector<16x32xf32> -> vector<16x32xf32>
    %312 = arith.addf %291, %311 : vector<16x32xf32>
    %313 = vector.extract_strided_slice %248 {offsets = [0, 0, 24], sizes = [2, 8, 8], strides = [1, 1, 1]} : vector<2x8x96xf32> to vector<2x8x8xf32>
    %314 = vector.extract_strided_slice %248 {offsets = [0, 0, 56], sizes = [2, 8, 8], strides = [1, 1, 1]} : vector<2x8x96xf32> to vector<2x8x8xf32>
    %315 = vector.extract_strided_slice %248 {offsets = [0, 0, 88], sizes = [2, 8, 8], strides = [1, 1, 1]} : vector<2x8x96xf32> to vector<2x8x8xf32>
    "tpu.trace_start"() <{level = 10 : i32, message = "bqd,bkd->bqk"}> : () -> ()
    %cst_94 = arith.constant dense<0.000000e+00> : vector<2x8x8xf32>
    %316 = tpu.matmul %313, %314, %cst_94 {dimension_numbers = #tpu.dot_dimension_numbers<[2], [2], [1], [1], [0, 0, 0, 1, 1, 1], [0], [0]>} : vector<2x8x8xf32>, vector<2x8x8xf32>, vector<2x8x8xf32> -> vector<2x8x8xf32>
    "tpu.trace_stop"() : () -> ()
    %317 = vector.broadcast %12 : vector<1x8x8xf32> to vector<2x8x8xf32>
    %318 = arith.addf %316, %317 : vector<2x8x8xf32>
    %cst_95 = arith.constant dense<0xFF800000> : vector<2x8xf32>
    %319 = vector.multi_reduction <maximumf>, %318, %cst_95 [2] : vector<2x8x8xf32> to vector<2x8xf32>
    %320 = vector.shape_cast %319 : vector<2x8xf32> to vector<2x8x1xf32>
    %321 = vector.broadcast %320 : vector<2x8x1xf32> to vector<2x8x8xf32>
    %322 = arith.subf %318, %321 : vector<2x8x8xf32>
    %323 = math.exp %322 : vector<2x8x8xf32>
    %cst_96 = arith.constant dense<0.000000e+00> : vector<2x8xf32>
    %324 = vector.multi_reduction <add>, %323, %cst_96 [2] : vector<2x8x8xf32> to vector<2x8xf32>
    %325 = vector.shape_cast %324 : vector<2x8xf32> to vector<2x8x1xf32>
    %326 = tpu.reciprocal %325 {approx = true} : vector<2x8x1xf32> -> vector<2x8x1xf32>
    %327 = vector.broadcast %326 : vector<2x8x1xf32> to vector<2x8x8xf32>
    %328 = arith.mulf %323, %327 : vector<2x8x8xf32>
    "tpu.trace_start"() <{level = 10 : i32, message = "bqk,bkd->bqd"}> : () -> ()
    %cst_97 = arith.constant dense<0.000000e+00> : vector<2x8x8xf32>
    %329 = tpu.matmul %328, %315, %cst_97 {dimension_numbers = #tpu.dot_dimension_numbers<[2], [1], [1], [2], [0, 0, 0, 1, 1, 2], [0], [0]>} : vector<2x8x8xf32>, vector<2x8x8xf32>, vector<2x8x8xf32> -> vector<2x8x8xf32>
    "tpu.trace_stop"() : () -> ()
    %330 = vector.shape_cast %329 : vector<2x8x8xf32> to vector<16x8xf32>
    %331 = vector.extract_strided_slice %217 {offsets = [24, 0], sizes = [8, 32], strides = [1, 1]} : vector<32x32xf32> to vector<8x32xf32>
    %cst_98 = arith.constant dense<0.000000e+00> : vector<16x32xf32>
    %332 = tpu.matmul %330, %331, %cst_98 {dimension_numbers = #tpu.dot_dimension_numbers<[1], [0], [0], [1], [0, 0, 1, 1], [], []>} : vector<16x8xf32>, vector<8x32xf32>, vector<16x32xf32> -> vector<16x32xf32>
    %333 = arith.addf %312, %332 : vector<16x32xf32>
    %334 = arith.addf %197, %333 : vector<16x32xf32>
    %335 = vector.shape_cast %205 : vector<32xf32> to vector<1x32xf32>
    %336 = vector.broadcast %335 : vector<1x32xf32> to vector<16x32xf32>
    %337 = arith.addf %334, %336 : vector<16x32xf32>
    %cst_99 = arith.constant dense<0.000000e+00> : vector<16xf32>
    %338 = vector.multi_reduction <add>, %337, %cst_99 [1] : vector<16x32xf32> to vector<16xf32>
    %339 = vector.shape_cast %338 : vector<16xf32> to vector<16x1xf32>
    %cst_100 = arith.constant 3.200000e+01 : f32
    %340 = vector.broadcast %cst_100 : f32 to vector<16x1xf32>
    %341 = arith.divf %339, %340 : vector<16x1xf32>
    %342 = vector.broadcast %341 : vector<16x1xf32> to vector<16x32xf32>
    %343 = arith.subf %337, %342 : vector<16x32xf32>
    %344 = arith.mulf %343, %343 : vector<16x32xf32>
    %cst_101 = arith.constant dense<0.000000e+00> : vector<16xf32>
    %345 = vector.multi_reduction <add>, %344, %cst_101 [1] : vector<16x32xf32> to vector<16xf32>
    %346 = vector.shape_cast %345 : vector<16xf32> to vector<16x1xf32>
    %cst_102 = arith.constant 3.200000e+01 : f32
    %347 = vector.broadcast %cst_102 : f32 to vector<16x1xf32>
    %348 = arith.divf %346, %347 : vector<16x1xf32>
    %349 = vector.broadcast %341 : vector<16x1xf32> to vector<16x32xf32>
    %350 = arith.subf %337, %349 : vector<16x32xf32>
    %cst_103 = arith.constant 9.99999974E-6 : f32
    %351 = vector.broadcast %cst_103 : f32 to vector<16x1xf32>
    %352 = arith.addf %348, %351 : vector<16x1xf32>
    %353 = math.rsqrt %352 : vector<16x1xf32>
    %354 = vector.broadcast %353 : vector<16x1xf32> to vector<16x32xf32>
    %355 = arith.mulf %350, %354 : vector<16x32xf32>
    %356 = vector.shape_cast %207 : vector<32xf32> to vector<1x32xf32>
    %357 = vector.broadcast %356 : vector<1x32xf32> to vector<16x32xf32>
    %358 = arith.mulf %355, %357 : vector<16x32xf32>
    %359 = vector.shape_cast %209 : vector<32xf32> to vector<1x32xf32>
    %360 = vector.broadcast %359 : vector<1x32xf32> to vector<16x32xf32>
    %361 = arith.addf %358, %360 : vector<16x32xf32>
    %c1_104 = arith.constant 1 : index
    %c0_105 = arith.constant 0 : index
    %c0_106 = arith.constant 0 : index
    %362 = vector.load %arg8[%c1_104, %c0_105, %c0_106] : memref<2x32x128xf32, #tpu.memory_space<vmem>>, vector<1x32x128xf32>
    %363 = vector.shape_cast %362 : vector<1x32x128xf32> to vector<32x128xf32>
    %cst_107 = arith.constant dense<0.000000e+00> : vector<16x128xf32>
    %364 = tpu.matmul %361, %363, %cst_107 {dimension_numbers = #tpu.dot_dimension_numbers<[1], [0], [0], [1], [0, 0, 1, 1], [], []>} : vector<16x32xf32>, vector<32x128xf32>, vector<16x128xf32> -> vector<16x128xf32>
    %365 = vector.shape_cast %215 : vector<128xf32> to vector<1x128xf32>
    %366 = vector.broadcast %365 : vector<1x128xf32> to vector<16x128xf32>
    %367 = arith.addf %364, %366 : vector<16x128xf32>
    %cst_108 = arith.constant 1.702000e+00 : f32
    %368 = vector.broadcast %cst_108 : f32 to vector<16x128xf32>
    %369 = arith.mulf %368, %367 : vector<16x128xf32>
    %370 = arith.negf %369 : vector<16x128xf32>
    %371 = math.exp %370 : vector<16x128xf32>
    %cst_109 = arith.constant 1.000000e+00 : f32
    %372 = vector.broadcast %cst_109 : f32 to vector<16x128xf32>
    %373 = arith.addf %372, %371 : vector<16x128xf32>
    %374 = arith.divf %372, %373 : vector<16x128xf32>
    %375 = arith.mulf %367, %374 : vector<16x128xf32>
    %c1_110 = arith.constant 1 : index
    %c0_111 = arith.constant 0 : index
    %c0_112 = arith.constant 0 : index
    %376 = vector.load %arg9[%c1_110, %c0_111, %c0_112] : memref<2x128x32xf32, #tpu.memory_space<vmem>>, vector<1x128x32xf32>
    %377 = vector.shape_cast %376 : vector<1x128x32xf32> to vector<128x32xf32>
    %cst_113 = arith.constant dense<0.000000e+00> : vector<16x32xf32>
    %378 = tpu.matmul %375, %377, %cst_113 {dimension_numbers = #tpu.dot_dimension_numbers<[1], [0], [0], [1], [0, 0, 1, 1], [], []>} : vector<16x128xf32>, vector<128x32xf32>, vector<16x32xf32> -> vector<16x32xf32>
    %379 = arith.addf %337, %378 : vector<16x32xf32>
    %380 = vector.shape_cast %211 : vector<32xf32> to vector<1x32xf32>
    %381 = vector.broadcast %380 : vector<1x32xf32> to vector<16x32xf32>
    %382 = arith.addf %379, %381 : vector<16x32xf32>
    %383 = vector.shape_cast %382 : vector<16x32xf32> to vector<2x8x32xf32>
    %384 = tpu.iota {dimensions = array<i32: 1>} : vector<2x8xi32>
    %c0_114 = arith.constant 0 : index
    %c0_115 = arith.constant 0 : index
    %385 = vector.load %arg0[%c0_114, %c0_115] : memref<2x1xi32, #tpu.memory_space<vmem>>, vector<2x1xi32>
    %386 = vector.broadcast %385 : vector<2x1xi32> to vector<2x8xi32>
    %387 = arith.cmpi eq, %384, %386 : vector<2x8xi32>
    %388 = arith.extui %387 : vector<2x8xi1> to vector<2x8xi32>
    %389 = arith.sitofp %388 : vector<2x8xi32> to vector<2x8xf32>
    %390 = vector.shape_cast %389 : vector<2x8xf32> to vector<2x8x1xf32>
    %391 = vector.broadcast %390 : vector<2x8x1xf32> to vector<2x8x32xf32>
    %392 = arith.mulf %383, %391 : vector<2x8x32xf32>
    %cst_116 = arith.constant dense<0.000000e+00> : vector<2x32xf32>
    %393 = vector.multi_reduction <add>, %392, %cst_116 [1] : vector<2x8x32xf32> to vector<2x32xf32>
    %c0_117 = arith.constant 0 : index
    %c0_118 = arith.constant 0 : index
    %394 = vector.load %arg10[%c0_117, %c0_118] : memref<2x32xf32, #tpu.memory_space<vmem>>, vector<2x32xf32>
    %395 = vector.extract_strided_slice %394 {offsets = [0, 0], sizes = [1, 32], strides = [1, 1]} : vector<2x32xf32> to vector<1x32xf32>
    %396 = vector.shape_cast %395 : vector<1x32xf32> to vector<32xf32>
    %397 = vector.extract_strided_slice %394 {offsets = [1, 0], sizes = [1, 32], strides = [1, 1]} : vector<2x32xf32> to vector<1x32xf32>
    %398 = vector.shape_cast %397 : vector<1x32xf32> to vector<32xf32>
    %cst_119 = arith.constant dense<0.000000e+00> : vector<2xf32>
    %399 = vector.multi_reduction <add>, %393, %cst_119 [1] : vector<2x32xf32> to vector<2xf32>
    %400 = vector.shape_cast %399 : vector<2xf32> to vector<2x1xf32>
    %cst_120 = arith.constant 3.200000e+01 : f32
    %401 = vector.broadcast %cst_120 : f32 to vector<2x1xf32>
    %402 = arith.divf %400, %401 : vector<2x1xf32>
    %403 = vector.broadcast %402 : vector<2x1xf32> to vector<2x32xf32>
    %404 = arith.subf %393, %403 : vector<2x32xf32>
    %405 = arith.mulf %404, %404 : vector<2x32xf32>
    %cst_121 = arith.constant dense<0.000000e+00> : vector<2xf32>
    %406 = vector.multi_reduction <add>, %405, %cst_121 [1] : vector<2x32xf32> to vector<2xf32>
    %407 = vector.shape_cast %406 : vector<2xf32> to vector<2x1xf32>
    %cst_122 = arith.constant 3.200000e+01 : f32
    %408 = vector.broadcast %cst_122 : f32 to vector<2x1xf32>
    %409 = arith.divf %407, %408 : vector<2x1xf32>
    %410 = vector.broadcast %402 : vector<2x1xf32> to vector<2x32xf32>
    %411 = arith.subf %393, %410 : vector<2x32xf32>
    %cst_123 = arith.constant 9.99999974E-6 : f32
    %412 = vector.broadcast %cst_123 : f32 to vector<2x1xf32>
    %413 = arith.addf %409, %412 : vector<2x1xf32>
    %414 = math.rsqrt %413 : vector<2x1xf32>
    %415 = vector.broadcast %414 : vector<2x1xf32> to vector<2x32xf32>
    %416 = arith.mulf %411, %415 : vector<2x32xf32>
    %417 = vector.shape_cast %396 : vector<32xf32> to vector<1x32xf32>
    %418 = vector.broadcast %417 : vector<1x32xf32> to vector<2x32xf32>
    %419 = arith.mulf %416, %418 : vector<2x32xf32>
    %420 = vector.shape_cast %398 : vector<32xf32> to vector<1x32xf32>
    %421 = vector.broadcast %420 : vector<1x32xf32> to vector<2x32xf32>
    %422 = arith.addf %419, %421 : vector<2x32xf32>
    %c0_124 = arith.constant 0 : index
    %c0_125 = arith.constant 0 : index
    %423 = vector.load %arg11[%c0_124, %c0_125] : memref<32x32xf32, #tpu.memory_space<vmem>>, vector<32x32xf32>
    %cst_126 = arith.constant dense<0.000000e+00> : vector<2x32xf32>
    %424 = tpu.matmul %422, %423, %cst_126 {dimension_numbers = #tpu.dot_dimension_numbers<[1], [0], [0], [1], [0, 0, 1, 1], [], []>} : vector<2x32xf32>, vector<32x32xf32>, vector<2x32xf32> -> vector<2x32xf32>
    %c0_127 = arith.constant 0 : index
    %c0_128 = arith.constant 0 : index
    %425 = vector.load %arg12[%c0_127, %c0_128] : memref<2x32xf32, #tpu.memory_space<vmem>>, vector<2x32xf32>
    tpu.vector_store %arg12[%c0_127, %c0_128], %424 {strides = array<i32>} : memref<2x32xf32, #tpu.memory_space<vmem>>, vector<2x32xf32>,
    return
  }
}

</mosaic_0001>

<bundles_post_ra>
// kernel: tpu_custom_call.1
= control target key start
LH: loop header
LB: loop body
LE: loop exit
PB: predicated region body
PF: predicated region fallthrough
CT: control target
= control target key end

     0   :  { %vm60_vm0 = vcmask 261120   ;;  %s2920_s0 = inlined_call_operand.vmem [shape: s32[2,1], index: 0, kind: input, shape index: {}]   ;;  %s2921_s1 = inlined_call_operand.vmem [shape: f32[2,8,32], index: 1, kind: input, shape index: {}]   ;;  %s2922_s2 = inlined_call_operand.vmem [shape: f32[8,32], index: 2, kind: input, shape index: {}]   ;;  %s2923_s3 = inlined_call_operand.vmem [shape: f32[2,6,32], index: 3, kind: input, shape index: {}]   ;;  %s2924_s4 = inlined_call_operand.vmem [shape: f32[2,96], index: 4, kind: input, shape index: {}]   ;;  %s2925_s5 = inlined_call_operand.vmem [shape: f32[2,128], index: 5, kind: input, shape index: {}]   ;;  %s2926_s6 = inlined_call_operand.vmem [shape: f32[2,32,96], index: 6, kind: input, shape index: {}]   ;;  %s2927_s7 = inlined_call_operand.vmem [shape: f32[2,32,32], index: 7, kind: input, shape index: {}]   ;;  %s2928_s8 = inlined_call_operand.vmem [shape: f32[2,32,128], index: 8, kind: input, shape index: {}]   ;;  %s2929_s9 = inlined_call_operand.vmem [shape: f32[2,128,32], index: 9, kind: input, shape index: {}]   ;;  %s2930_s10 = inlined_call_operand.vmem [shape: f32[2,32], index: 10, kind: input, shape index: {}]   ;;  %s2931_s11 = inlined_call_operand.vmem [shape: f32[32,32], index: 11, kind: input, shape index: {}]   ;;  %s2932_s12 = inlined_call_operand.hbm [shape: f32[2,32], index: 12, kind: output, shape index: {}]  }
   0x1   :  { %v42_v0 = vld [vmem:[%s2921_s1] sm:$0xff]  ;;  %v43_v3 = vld [vmem:[%s2921_s1 + $0x8] sm:$0xff] }
   0x2   :  { %v44_v1 = vld [vmem:[%s2922_s2] sm:$0xff] }
   0x3   :  { %v2368_v2 = vadd.f32 %v44_v1, %v42_v0 }
   0x4   :  { %17 = vsyncpa [#allocation3], 0  ;;  %v2375_v5 = vadd.f32 %v44_v1, %v43_v3  ;;  %v2281_v7 = vmov 32.0   ;;  %v121_v24 = vld [vmem:[%s2926_s6 + $0x18] sm:$0xff]  ;;  %v120_v25 = vld [vmem:[%s2926_s6 + $0x10] sm:$0xff]  ;;  %s2282_s19 = smov 88   ;;  %v47_v62 = vlaneseq }
   0x5   :  { %v61_v4 = vsel %vm60_vm0, %v2368_v2, 0.0  ;;  %2155 = vrcp.f32 %v2281_v7  ;;  %141 = vmatpush.msra.mxu0 %v121_v24  ;;  %v119_v26 = vld [vmem:[%s2926_s6 + $0x8] sm:$0xff]  ;;  %v118_v27 = vld [vmem:[%s2926_s6] sm:$0xff]  ;;  %s2283_s20 = smov 96   ;;  %s2284_s21 = smov 120   ;;  %vm155_vm8 = vcmask 64512  }
   0x6   :  { %62 = vadd.xlane.f32.xlu0 %v61_v4  ;;  %v64_v6 = vsel %vm60_vm0, %v2375_v5, 0.0  ;;  %v2404_v39 = vld [vmem:[%s2923_s3] sm:$0x3f]  ;;  %v2425_v63 = vshrl.u32 %v47_v62, 7  ;;  %v2285_v7 = vmov -1e+30  }
   0x7   :  { %142 = vmatpush.msra.mxu0 %v120_v25  ;;  %v112_v43 = vperm.slane %v2404_v39, 0  ;;  %v115_v47 = vperm.slane %v2404_v39, 1  ;;  %v2151_v57 = vld [vmem:[%s2924_s4] ss:$0 sm:$0xff]  ;;  %s2286_s22 = smov 64   ;;  %s2287_s23 = smov 80  }
   0x8   :  { %2144 = vset.pattern.permute.xlu1 %v2425_v63  ;;  %s2288_s24 = smov 56   ;;  %s2289_s25 = smov 112  }
   0x9   :  { %143 = vmatpush.msra.mxu0 %v119_v26  ;;  %s2290_s28 = smov 48   ;;  %s2291_s29 = smov 72  }
   0xa   :  { %s2292_s30 = smov 104   ;;  %s2933_s15 = smov 40  }
   0xb   :  { %v2156_v8 = vpop.eup %2155  ;;  %144 = vmatpush.msra.mxu0 %v118_v27 }
   0xc   :  { %v68_v9 = vmul.f32 32.0, %v2156_v8  ;;  %vm72_vm1 = vweird.f32 %v2156_v8 }
   0xe   :  { %65 = vadd.xlane.f32.xlu0 %v64_v6  ;;  %v69_v10 = vsub.f32 1.0, %v68_v9  ;;  %v2436_v6 = vand.u32 127, %v47_v62 }
  0x10   :  { %v70_v11 = vmul.f32 %v2156_v8, %v69_v10  ;;  %vm51_vm9 = vcmp.le.s32.totalorder %v2436_v6, %v2425_v63 }
  0x12   :  { %v71_v12 = vadd.f32 %v2156_v8, %v70_v11 }
  0x14   :  { %v2379_v13 = vsel %vm72_vm1, %v2156_v8, %v71_v12  ;;  %v2440_v8 = vsel %vm51_vm9, 0.0, %v2285_v7 }
  0x79   :  { %v63_v14 = vpop.xlane.xlu0 %62 }
  0x7a   :  { %v74_v15 = vmul.f32 %v2379_v13, %v63_v14 }
  0x7c   :  { %v76_v16 = vsub.f32 %v2368_v2, %v74_v15 }
  0x7e   :  { %v78_v17 = vmul.f32 %v76_v16, %v76_v16 }
  0x80   :  { %v80_v18 = vsel %vm60_vm0, %v78_v17, 0.0 }
  0x81   :  { %81 = vadd.xlane.f32.xlu1 %v80_v18  ;;  %v66_v19 = vpop.xlane.xlu0 %65 }
  0x82   :  { %v75_v20 = vmul.f32 %v2379_v13, %v66_v19 }
  0x84   :  { %v77_v21 = vsub.f32 %v2375_v5, %v75_v20 }
  0x86   :  { %v79_v22 = vmul.f32 %v77_v21, %v77_v21 }
  0x88   :  { %v83_v23 = vsel %vm60_vm0, %v79_v22, 0.0 }
  0x89   :  { %84 = vadd.xlane.f32.xlu1 %v83_v23 }
  0xf4   :  { %v82_v28 = vpop.xlane.xlu1 %81 }
  0xf5   :  { %v86_v29 = vmul.f32 %v82_v28, %v2379_v13 }
  0xf7   :  { %v88_v30 = vadd.f32 1e-05, %v86_v29 }
  0xf9   :  { %2157 = vrsqrt.f32 %v88_v30  ;;  %vm96_vm3 = vweird.f32 %v88_v30 }
  0xfc   :  { %v85_v31 = vpop.xlane.xlu1 %84 }
  0xfd   :  { %v87_v32 = vmul.f32 %v85_v31, %v2379_v13 }
  0xff   :  { %v2158_v33 = vpop.eup %2157  ;;  %v89_v34 = vadd.f32 1e-05, %v87_v32 }
 0x100   :  { %v91_v35 = vmul.f32 %v2158_v33, %v88_v30  ;;  %vm97_vm2 = vweird.f32 %v2158_v33 }
 0x101   :  { %2159 = vrsqrt.f32 %v89_v34  ;;  %vm98_vm4 = vmor %vm96_vm3, %vm97_vm2  ;;  %vm106_vm5 = vweird.f32 %v89_v34 }
 0x102   :  { %v92_v36 = vmul.f32 %v2158_v33, %v91_v35 }
 0x104   :  { %v93_v37 = vmul.f32 0.5, %v92_v36 }
 0x106   :  { %v94_v38 = vsub.f32 1.5, %v93_v37 }
 0x107   :  { %v2160_v40 = vpop.eup %2159 }
 0x108   :  { %v95_v41 = vmul.f32 %v2158_v33, %v94_v38  ;;  %v101_v42 = vmul.f32 %v2160_v40, %v89_v34  ;;  %vm107_vm6 = vweird.f32 %v2160_v40 }
 0x109   :  { %vm108_vm7 = vmor %vm106_vm5, %vm107_vm6 }
 0x10a   :  { %v99_v44 = vsel %vm98_vm4, %v2158_v33, %v95_v41  ;;  %v102_v45 = vmul.f32 %v2160_v40, %v101_v42 }
 0x10b   :  { %v110_v46 = vmul.f32 %v99_v44, %v76_v16 }
 0x10c   :  { %v103_v48 = vmul.f32 0.5, %v102_v45 }
 0x10d   :  { %v113_v49 = vmul.f32 %v112_v43, %v110_v46 }
 0x10e   :  { %v104_v50 = vsub.f32 1.5, %v103_v48 }
 0x10f   :  { %v116_v51 = vadd.f32 %v115_v47, %v113_v49 }
 0x110   :  { %v105_v52 = vmul.f32 %v2160_v40, %v104_v50 }
 0x111   :  { %2010 = vmatmul.msk.f32.vlgmr.msra.gmra.mxu0 %vm60_vm0, %v116_v51 }
 0x112   :  { %v109_v53 = vsel %vm108_vm7, %v2160_v40, %v105_v52 }
 0x113   :  { %v111_v54 = vmul.f32 %v109_v53, %v77_v21  ;;  %v56_v53 = vld [vmem:[%s2927_s7] sm:$0xff] }
 0x115   :  { %v114_v55 = vmul.f32 %v112_v43, %v111_v54 }
 0x117   :  { %v117_v56 = vadd.f32 %v115_v47, %v114_v55 }
 0x119   :  { %2011 = vmatmul.msk.f32.gmra.mxu0 %vm60_vm0, %v117_v56  ;;  %v57_v56 = vld [vmem:[%s2927_s7 + $0x8] sm:$0xff] }
 0x11a   :  { %432 = vmatpush.msra.mxu2 %v57_v56 }
 0x18e   :  { %v146_v58 = vpop.f32.mrf.mxu0 }
 0x18f   :  { %v2413_v59 = vadd.f32 %v2151_v57, %v146_v58 }
 0x191   :  { %283 = vrot.lane.b32.xlu0 %v2413_v59, %s2282_s19  ;;  %153 = vrot.lane.b32.xlu2 %v2413_v59, %s2283_s20 }
 0x192   :  { %281 = vrot.lane.b32.xlu1 %v2413_v59, %s2284_s21 }
 0x196   :  { %v149_v60 = vpop.f32.mrf.mxu0 }
 0x197   :  { %v2421_v61 = vadd.f32 %v2151_v57, %v149_v60 }
 0x199   :  { %181 = vrot.lane.b32.xlu2 %v2421_v61, %s2283_s20  ;;  %v2133_v18 = vpack.i.bf16 %v2421_v61, %v2413_v59 }
 0x1eb   :  { %v154_v0 = vpop.permute.xlu2 %153 }
 0x1ec   :  { %2012 = vmatpush.xpose.msk.msra.mxu1 %vm155_vm8, %v154_v0 }
 0x1ef   :  { %2013 = vmatmul.msk.f32.vlgmr.msra.gmra.mxu1 %vm155_vm8, %v2413_v59 }
 0x1f3   :  { %v182_v1 = vpop.permute.xlu2 %181 }
 0x1f4   :  { %2014 = vmatpush.xpose.msk.msrb.mxu0 %vm155_vm8, %v182_v1 }
 0x1f7   :  { %2015 = vmatmul.msk.f32.vlgmr.msrb.gmra.mxu0 %vm155_vm8, %v2421_v61 }
 0x1f8   :  { %461 = vmatpush.msra.mxu0 %v56_v53 }
 0x203   :  { %v284_v3 = vpop.permute.xlu0 %283 }
 0x204   :  { %2018 = vmatpush.xpose.msk.msrb.mxu1 %vm155_vm8, %v284_v3  ;;  %v282_v4 = vpop.permute.xlu1 %281 }
 0x207   :  { %2019 = vmatmul.msk.f32.vlgmr.msrb.gmra.mxu1 %vm155_vm8, %v282_v4 }
 0x26c   :  { %v177_v9 = vpop.f32.mrf.mxu1 }
 0x26d   :  { %v178_v10 = vadd.f32 %v177_v9, %v2440_v8 }
 0x26f   :  { %v207_v11 = vsel %vm155_vm8, %v178_v10, -inf }
 0x270   :  { %208 = vmax.xlane.f32.xlu2 %v207_v11 }
 0x274   :  { %v204_v12 = vpop.f32.mrf.mxu0 }
 0x275   :  { %v205_v14 = vadd.f32 %v204_v12, %v2440_v8 }
 0x277   :  { %v210_v15 = vsel %vm155_vm8, %v205_v14, -inf }
 0x278   :  { %211 = vmax.xlane.f32.xlu0 %v210_v15 }
 0x284   :  { %v306_v16 = vpop.f32.mrf.mxu1 }
 0x285   :  { %v307_v17 = vadd.f32 %v306_v16, %v2440_v8 }
 0x287   :  { %v337_v19 = vsel %vm155_vm8, %v307_v17, -inf }
 0x288   :  { %2134 = vrot.lane.b32.xlu2 %v2133_v18, %s2286_s22  ;;  %338 = vmax.xlane.f32.xlu1 %v337_v19 }
 0x28c   :  { %311 = vrot.lane.b32.xlu0 %v2421_v61, %s2282_s19 }
 0x294   :  { %471 = vrot.lane.b32.xlu0 %v2413_v59, %s2287_s23 }
 0x2e3   :  { %v209_v20 = vpop.xlane.xlu2 %208 }
 0x2e4   :  { %v213_v21 = vsub.f32 %v178_v10, %v209_v20 }
 0x2e6   :  { %v215_v22 = vmul.f32 1.442695, %v213_v21 }
 0x2e8   :  { %2161 = vpow2.f32 %v215_v22 }
 0x2eb   :  { %v2135_v23 = vpop.permute.xlu2 %2134  ;;  %v212_v24 = vpop.xlane.xlu0 %211 }
 0x2ec   :  { %v214_v25 = vsub.f32 %v205_v14, %v212_v24  ;;  %v2136_v26 = vunpack.i.l.bf16 %v2135_v23  ;;  %v2137_v27 = vunpack.i.h.bf16 %v2135_v23 }
 0x2ee   :  { %v2162_v28 = vpop.eup %2161  ;;  %v217_v29 = vmul.f32 1.442695, %v214_v25  ;;  %250 = vmatpush.msra.mxu3 %v2136_v26 }
 0x2ef   :  { %v219_v30 = vsel %vm155_vm8, %v2162_v28, 0.0 }
 0x2f0   :  { %276 = vmatpush.msrb.mxu3 %v2137_v27  ;;  %2163 = vpow2.f32 %v217_v29  ;;  %220 = vadd.xlane.f32.xlu2 %v219_v30 }
 0x2f6   :  { %v2164_v31 = vpop.eup %2163 }
 0x2f7   :  { %v222_v32 = vsel %vm155_vm8, %v2164_v31, 0.0 }
 0x2f8   :  { %223 = vadd.xlane.f32.xlu2 %v222_v32 }
 0x2fb   :  { %v339_v33 = vpop.xlane.xlu1 %338 }
 0x2fc   :  { %v343_v34 = vsub.f32 %v307_v17, %v339_v33 }
 0x2fe   :  { %v345_v35 = vmul.f32 1.442695, %v343_v34  ;;  %v312_v43 = vpop.permute.xlu0 %311 }
 0x300   :  { %2165 = vpow2.f32 %v345_v35 }
 0x306   :  { %v2166_v36 = vpop.eup %2165  ;;  %v472_v49 = vpop.permute.xlu0 %471 }
 0x307   :  { %v349_v37 = vsel %vm155_vm8, %v2166_v36, 0.0 }
 0x308   :  { %350 = vadd.xlane.f32.xlu1 %v349_v37  ;;  %v58_v37 = vld [vmem:[%s2927_s7 + $0x10] sm:$0xff] }
 0x309   :  { %620 = vmatpush.msrb.mxu2 %v58_v37 }
 0x310   :  { %359 = vrot.lane.b32.xlu2 %v2413_v59, %s2288_s24 }
 0x318   :  { %469 = vrot.lane.b32.xlu2 %v2413_v59, %s2289_s25 }
 0x321   :  { %309 = vrot.lane.b32.xlu1 %v2421_v61, %s2284_s21 }
 0x329   :  { %499 = vrot.lane.b32.xlu1 %v2421_v61, %s2287_s23 }
 0x363   :  { %v221_v38 = vpop.xlane.xlu2 %220 }
 0x364   :  { %2167 = vrcp.f32 %v221_v38 }
 0x36a   :  { %v2168_v40 = vpop.eup %2167 }
 0x36b   :  { %v224_v41 = vpop.xlane.xlu2 %223  ;;  %v227_v42 = vmul.f32 %v2168_v40, %v2162_v28 }
 0x36c   :  { %2169 = vrcp.f32 %v224_v41 }
 0x36d   :  { %2016 = vmatmul.msk.f32.vlgmr.msra.gmra.mxu3 %vm155_vm8, %v227_v42 }
 0x36e   :  { %2020 = vmatpush.xpose.msk.msra.mxu3 %vm155_vm8, %v312_v43 }
 0x372   :  { %v2170_v44 = vpop.eup %2169 }
 0x373   :  { %v360_v45 = vpop.permute.xlu2 %359  ;;  %v228_v46 = vmul.f32 %v2170_v44, %v2164_v31 }
 0x375   :  { %2017 = vmatmul.msk.f32.vlgmr.msrb.gmra.mxu3 %vm155_vm8, %v228_v46 }
 0x376   :  { %380 = vmatpush.msrb.mxu3 %v360_v45 }
 0x37b   :  { %v351_v47 = vpop.xlane.xlu1 %350  ;;  %v470_v52 = vpop.permute.xlu2 %469 }
 0x37c   :  { %2171 = vrcp.f32 %v351_v47 }
 0x382   :  { %v2172_v50 = vpop.eup %2171 }
 0x383   :  { %v357_v51 = vmul.f32 %v2172_v50, %v2166_v36 }
 0x393   :  { %v310_v48 = vpop.permute.xlu1 %309 }
 0x394   :  { %2021 = vmatmul.msk.f32.vlgmr.msra.gmra.mxu3 %vm155_vm8, %v310_v48 }
 0x395   :  { %2028 = vmatpush.xpose.msk.msra.mxu3 %vm155_vm8, %v472_v49 }
 0x39b   :  { %v500_v17 = vpop.permute.xlu1 %499 }
 0x39c   :  { %2022 = vmatmul.msk.f32.vlgmr.msrb.gmra.mxu3 %vm155_vm8, %v357_v51 }
 0x3a4   :  { %2029 = vmatmul.msk.f32.vlgmr.msra.gmra.mxu3 %vm155_vm8, %v470_v52 }
 0x3f0   :  { %v252_v54 = vpop.f32.mrf.mxu3 }
 0x3f1   :  { %2026 = vmatmul.msk.f32.vlgmr.msra.gmra.mxu0 %vm155_vm8, %v252_v54 }
 0x3f8   :  { %v278_v55 = vpop.f32.mrf.mxu3 }
 0x3f9   :  { %2027 = vmatmul.msk.f32.gmra.mxu0 %vm155_vm8, %v278_v55 }
 0x417   :  { %v334_v57 = vpop.f32.mrf.mxu3 }
 0x418   :  { %v335_v58 = vadd.f32 %v334_v57, %v2440_v8 }
 0x41a   :  { %v340_v60 = vsel %vm155_vm8, %v335_v58, -inf }
 0x41b   :  { %341 = vmax.xlane.f32.xlu0 %v340_v60 }
 0x41f   :  { %v382_v62 = vpop.f32.mrf.mxu3 }
 0x420   :  { %2024 = vmatmul.msk.f32.vlgmr.msra.gmra.mxu2 %vm155_vm8, %v382_v62 }
 0x427   :  { %v494_v0 = vpop.f32.mrf.mxu3 }
 0x428   :  { %v495_v1 = vadd.f32 %v494_v0, %v2440_v8 }
 0x42a   :  { %v525_v3 = vsel %vm155_vm8, %v495_v1, -inf }
 0x42b   :  { %526 = vmax.xlane.f32.xlu2 %v525_v3 }
 0x42f   :  { %385 = vrot.lane.b32.xlu0 %v2421_v61, %s2288_s24 }
 0x437   :  { %547 = vrot.lane.b32.xlu0 %v2413_v59, %s2290_s28 }
 0x43f   :  { %632 = vrot.lane.b32.xlu0 %v2413_v59, %s2291_s29 }
 0x443   :  { %497 = vrot.lane.b32.xlu2 %v2421_v61, %s2289_s25 }
 0x447   :  { %630 = vrot.lane.b32.xlu0 %v2413_v59, %s2292_s30 }
 0x46e   :  { %v2507_v29 = vpop.f32.mrf.mxu0 }
 0x476   :  { %v2511_v32 = vpop.f32.mrf.mxu0 }
 0x48e   :  { %v342_v4 = vpop.xlane.xlu0 %341 }
 0x48f   :  { %v344_v7 = vsub.f32 %v335_v58, %v342_v4 }
 0x491   :  { %v347_v9 = vmul.f32 1.442695, %v344_v7 }
 0x493   :  { %2173 = vpow2.f32 %v347_v9 }
 0x499   :  { %v2174_v10 = vpop.eup %2173 }
 0x49a   :  { %v352_v11 = vsel %vm155_vm8, %v2174_v10, 0.0 }
 0x49b   :  { %353 = vadd.xlane.f32.xlu1 %v352_v11 }
 0x49e   :  { %v527_v12 = vpop.xlane.xlu2 %526 }
 0x49f   :  { %v531_v14 = vsub.f32 %v495_v1, %v527_v12 }
 0x4a1   :  { %v533_v15 = vmul.f32 1.442695, %v531_v14  ;;  %v386_v16 = vpop.permute.xlu0 %385 }
 0x4a2   :  { %406 = vmatpush.msra.mxu1 %v386_v16 }
 0x4a3   :  { %2175 = vpow2.f32 %v533_v15 }
 0x4a4   :  { %2030 = vmatpush.xpose.msk.msrb.mxu1 %vm155_vm8, %v500_v17 }
 0x4a6   :  { %v498_v25 = vpop.permute.xlu2 %497 }
 0x4a9   :  { %v2176_v18 = vpop.eup %2175  ;;  %v548_v19 = vpop.permute.xlu0 %547 }
 0x4aa   :  { %568 = vmatpush.msrb.mxu3 %v548_v19  ;;  %v537_v20 = vsel %vm155_vm8, %v2176_v18, 0.0 }
 0x4ab   :  { %538 = vadd.xlane.f32.xlu2 %v537_v20  ;;  %v434_v20 = vpop.f32.mrf.mxu2 }
 0x4b1   :  { %v633_v21 = vpop.permute.xlu0 %632 }
 0x4b2   :  { %2036 = vmatpush.xpose.msk.msrb.mxu0 %vm155_vm8, %v633_v21 }
 0x4b4   :  { %660 = vrot.lane.b32.xlu1 %v2421_v61, %s2291_s29 }
 0x4b9   :  { %v631_v22 = vpop.permute.xlu0 %630 }
 0x4ba   :  { %2037 = vmatmul.msk.f32.vlgmr.msrb.gmra.mxu0 %vm155_vm8, %v631_v22 }
 0x4c3   :  { %658 = vrot.lane.b32.xlu2 %v2421_v61, %s2292_s30 }
 0x50e   :  { %v354_v23 = vpop.xlane.xlu1 %353 }
 0x50f   :  { %2177 = vrcp.f32 %v354_v23  ;;  %v464_v23 = vadd.f32 %v2507_v29, %v434_v20 }
 0x515   :  { %v2178_v24 = vpop.eup %2177 }
 0x516   :  { %v358_v26 = vmul.f32 %v2178_v24, %v2174_v10 }
 0x518   :  { %2023 = vmatmul.msk.f32.vlgmr.msra.gmra.mxu1 %vm155_vm8, %v358_v26 }
 0x51e   :  { %v539_v27 = vpop.xlane.xlu2 %538 }
 0x51f   :  { %2179 = vrcp.f32 %v539_v27  ;;  %v793_v27 = vperm.slane %v2404_v39, 2 }
 0x520   :  { %2031 = vmatmul.msk.f32.vlgmr.msrb.gmra.mxu1 %vm155_vm8, %v498_v25 }
 0x525   :  { %v2180_v28 = vpop.eup %2179 }
 0x526   :  { %v545_v30 = vmul.f32 %v2180_v28, %v2176_v18  ;;  %v661_v31 = vpop.permute.xlu1 %660  ;;  %v659_v33 = vpop.permute.xlu2 %658 }
 0x527   :  { %2038 = vmatpush.xpose.msk.msra.mxu3 %vm155_vm8, %v661_v31 }
 0x528   :  { %2032 = vmatmul.msk.f32.vlgmr.msrb.gmra.mxu3 %vm155_vm8, %v545_v30 }
 0x530   :  { %2039 = vmatmul.msk.f32.vlgmr.msra.gmra.mxu3 %vm155_vm8, %v659_v33 }
 0x537   :  { %v655_v34 = vpop.f32.mrf.mxu0 }
 0x538   :  { %v656_v35 = vadd.f32 %v655_v34, %v2440_v8 }
 0x53a   :  { %v686_v36 = vsel %vm155_vm8, %v656_v35, -inf }
 0x53b   :  { %687 = vmax.xlane.f32.xlu0 %v686_v36 }
 0x595   :  { %v408_v38 = vpop.f32.mrf.mxu1 }
 0x596   :  { %2025 = vmatmul.msk.f32.gmra.mxu2 %vm155_vm8, %v408_v38 }
 0x59d   :  { %v522_v40 = vpop.f32.mrf.mxu1 }
 0x59e   :  { %v523_v41 = vadd.f32 %v522_v40, %v2440_v8 }
 0x5a0   :  { %v528_v42 = vsel %vm155_vm8, %v523_v41, -inf }
 0x5a1   :  { %529 = vmax.xlane.f32.xlu1 %v528_v42 }
 0x5ab   :  { %v570_v43 = vpop.f32.mrf.mxu3 }
 0x5ac   :  { %2034 = vmatmul.msk.f32.vlgmr.msrb.gmra.mxu2 %vm155_vm8, %v570_v43 }
 0x5ae   :  { %v688_v44 = vpop.xlane.xlu0 %687 }
 0x5af   :  { %v692_v45 = vsub.f32 %v656_v35, %v688_v44 }
 0x5b1   :  { %v694_v46 = vmul.f32 1.442695, %v692_v45 }
 0x5b3   :  { %2181 = vpow2.f32 %v694_v46  ;;  %v683_v47 = vpop.f32.mrf.mxu3 }
 0x5b4   :  { %v684_v48 = vadd.f32 %v683_v47, %v2440_v8 }
 0x5b6   :  { %v689_v49 = vsel %vm155_vm8, %v684_v48, -inf }
 0x5b7   :  { %690 = vmax.xlane.f32.xlu2 %v689_v49  ;;  %v848_v49 = vld [vmem:[%s2928_s8 + $0x10] sm:$0xff] }
 0x5b9   :  { %v2182_v50 = vpop.eup %2181 }
 0x5ba   :  { %v698_v51 = vsel %vm155_vm8, %v2182_v50, 0.0 }
 0x5bb   :  { %699 = vadd.xlane.f32.xlu0 %v698_v51  ;;  %v846_v51 = vld [vmem:[%s2928_s8] sm:$0xff] }
 0x5cf   :  { %573 = vrot.lane.b32.xlu2 %v2421_v61, %s2290_s28  ;;  %708 = vrot.lane.b32.xlu0 %v2413_v59, %s2933_s15 }
 0x614   :  { %v530_v52 = vpop.xlane.xlu1 %529 }
 0x615   :  { %v532_v53 = vsub.f32 %v523_v41, %v530_v52 }
 0x617   :  { %v535_v54 = vmul.f32 1.442695, %v532_v53 }
 0x619   :  { %2183 = vpow2.f32 %v535_v54  ;;  %v437_v21 = vpop.f32.mrf.mxu2 }
 0x61a   :  { %v467_v34 = vadd.f32 %v2511_v32, %v437_v21 }
 0x61f   :  { %v2184_v55 = vpop.eup %2183 }
 0x620   :  { %v540_v56 = vsel %vm155_vm8, %v2184_v55, 0.0 }
 0x621   :  { %541 = vadd.xlane.f32.xlu1 %v540_v56 }
 0x62a   :  { %v691_v57 = vpop.xlane.xlu2 %690 }
 0x62b   :  { %v693_v58 = vsub.f32 %v684_v48, %v691_v57  ;;  %v849_v48 = vld [vmem:[%s2928_s8 + $0x18] sm:$0xff] }
 0x62d   :  { %v696_v60 = vmul.f32 1.442695, %v693_v58 }
 0x62e   :  { %v700_v3 = vpop.xlane.xlu0 %699 }
 0x62f   :  { %2185 = vpow2.f32 %v696_v60  ;;  %v622_v22 = vpop.f32.mrf.mxu2 }
 0x630   :  { %v628_v24 = vadd.f32 %v622_v22, %v464_v23  ;;  %v937_v22 = vld [vmem:[%s2929_s9 + $0x78] sm:$0xff]  ;;  %v936_v23 = vld [vmem:[%s2929_s9 + $0x70] sm:$0xff] }
 0x631   :  { %938 = vmatpush.msra.mxu2 %v937_v22 }
 0x632   :  { %v574_v62 = vpop.permute.xlu2 %573 }
 0x633   :  { %594 = vmatpush.msra.mxu1 %v574_v62  ;;  %939 = vmatpush.msra.mxu2 %v936_v23 }
 0x635   :  { %v2186_v0 = vpop.eup %2185 }
 0x636   :  { %v701_v1 = vsel %vm155_vm8, %v2186_v0, 0.0 }
 0x637   :  { %702 = vadd.xlane.f32.xlu1 %v701_v1 }
 0x641   :  { %v709_v59 = vpop.permute.xlu0 %708 }
 0x642   :  { %729 = vmatpush.msrb.mxu1 %v709_v59  ;;  %v843_v59 = vperm.slane %v2404_v39, 4 }
 0x650   :  { %734 = vrot.lane.b32.xlu1 %v2421_v61, %s2933_s15  ;;  %v59_v61 = vld [vmem:[%s2927_s7 + $0x18] sm:$0xff] }
 0x651   :  { %781 = vmatpush.msrb.mxu3 %v59_v61 }
 0x694   :  { %v542_v4 = vpop.xlane.xlu1 %541 }
 0x695   :  { %2187 = vrcp.f32 %v542_v4 }
 0x696   :  { %2189 = vrcp.f32 %v700_v3 }
 0x69b   :  { %v2188_v7 = vpop.eup %2187 }
 0x69c   :  { %v546_v9 = vmul.f32 %v2188_v7, %v2184_v55  ;;  %v2190_v10 = vpop.eup %2189 }
 0x69d   :  { %v706_v11 = vmul.f32 %v2190_v10, %v2182_v50  ;;  %v847_v50 = vld [vmem:[%s2928_s8 + $0x8] sm:$0xff] }
 0x69e   :  { %2033 = vmatmul.msk.f32.vlgmr.msra.gmra.mxu1 %vm155_vm8, %v546_v9 }
 0x69f   :  { %869 = vmatpush.msra.mxu1 %v849_v48 }
 0x6a1   :  { %870 = vmatpush.msra.mxu1 %v848_v49 }
 0x6a3   :  { %871 = vmatpush.msra.mxu1 %v847_v50 }
 0x6a5   :  { %872 = vmatpush.msra.mxu1 %v846_v51 }
 0x6a6   :  { %2040 = vmatmul.msk.f32.vlgmr.msrb.gmra.mxu1 %vm155_vm8, %v706_v11 }
 0x6aa   :  { %v703_v12 = vpop.xlane.xlu1 %702 }
 0x6ab   :  { %2191 = vrcp.f32 %v703_v12 }
 0x6b1   :  { %v2192_v14 = vpop.eup %2191 }
 0x6b2   :  { %v707_v15 = vmul.f32 %v2192_v14, %v2186_v0  ;;  %v840_v0 = vperm.slane %v2404_v39, 3 }
 0x6c2   :  { %v735_v16 = vpop.permute.xlu1 %734 }
 0x6c3   :  { %755 = vmatpush.msra.mxu0 %v735_v16 }
 0x6c4   :  { %2041 = vmatmul.msk.f32.vlgmr.msra.gmra.mxu0 %vm155_vm8, %v707_v15 }
 0x71b   :  { %v596_v17 = vpop.f32.mrf.mxu1 }
 0x71c   :  { %2035 = vmatmul.msk.f32.gmra.mxu2 %vm155_vm8, %v596_v17 }
 0x723   :  { %v731_v18 = vpop.f32.mrf.mxu1 }
 0x724   :  { %2042 = vmatmul.msk.f32.vlgmr.msrb.gmra.mxu3 %vm155_vm8, %v731_v18 }
 0x741   :  { %v757_v19 = vpop.f32.mrf.mxu0 }
 0x742   :  { %2043 = vmatmul.msk.f32.gmra.mxu3 %vm155_vm8, %v757_v19 }
 0x79f   :  { %v625_v33 = vpop.f32.mrf.mxu2 }
 0x7a0   :  { %v629_v35 = vadd.f32 %v625_v33, %v467_v34  ;;  %v929_v33 = vld [vmem:[%s2929_s9 + $0x38] sm:$0xff]  ;;  %v928_v34 = vld [vmem:[%s2929_s9 + $0x30] sm:$0xff] }
 0x7a7   :  { %v783_v25 = vpop.f32.mrf.mxu3 }
 0x7a8   :  { %v789_v26 = vadd.f32 %v783_v25, %v628_v24  ;;  %v935_v24 = vld [vmem:[%s2929_s9 + $0x68] sm:$0xff]  ;;  %v934_v25 = vld [vmem:[%s2929_s9 + $0x60] sm:$0xff] }
 0x7a9   :  { %940 = vmatpush.msra.mxu2 %v935_v24 }
 0x7aa   :  { %v791_v28 = vadd.f32 %v789_v26, %v2368_v2  ;;  %v933_v26 = vld [vmem:[%s2929_s9 + $0x58] sm:$0xff] }
 0x7ab   :  { %941 = vmatpush.msra.mxu2 %v934_v25 }
 0x7ac   :  { %v2546_v30 = vadd.f32 %v793_v27, %v791_v28  ;;  %v931_v28 = vld [vmem:[%s2929_s9 + $0x48] sm:$0xff] }
 0x7ad   :  { %942 = vmatpush.msra.mxu2 %v933_v26 }
 0x7ae   :  { %v796_v31 = vsel %vm60_vm0, %v2546_v30, 0.0 }
 0x7af   :  { %797 = vadd.xlane.f32.xlu2 %v796_v31  ;;  %v930_v31 = vld [vmem:[%s2929_s9 + $0x40] sm:$0xff] }
 0x7c5   :  { %v786_v36 = vpop.f32.mrf.mxu3 }
 0x7c6   :  { %v790_v37 = vadd.f32 %v786_v36, %v629_v35  ;;  %v927_v35 = vld [vmem:[%s2929_s9 + $0x28] sm:$0xff]  ;;  %v926_v36 = vld [vmem:[%s2929_s9 + $0x20] sm:$0xff] }
 0x7c8   :  { %v792_v29 = vadd.f32 %v790_v37, %v2375_v5  ;;  %v925_v37 = vld [vmem:[%s2929_s9 + $0x18] sm:$0xff] }
 0x7ca   :  { %v2552_v38 = vadd.f32 %v793_v27, %v792_v29  ;;  %v932_v27 = vld [vmem:[%s2929_s9 + $0x50] sm:$0xff]  ;;  %v2152_v29 = vld [vmem:[%s2925_s5] ss:$0 sm:$0xff] }
 0x7cb   :  { %943 = vmatpush.msra.mxu2 %v932_v27 }
 0x7cc   :  { %v799_v40 = vsel %vm60_vm0, %v2552_v38, 0.0 }
 0x7cd   :  { %800 = vadd.xlane.f32.xlu0 %v799_v40  ;;  %944 = vmatpush.msra.mxu2 %v931_v28  ;;  %v924_v40 = vld [vmem:[%s2929_s9 + $0x10] sm:$0xff] }
 0x7cf   :  { %945 = vmatpush.msra.mxu2 %v930_v31 }
 0x7d1   :  { %946 = vmatpush.msra.mxu2 %v929_v33 }
 0x7d3   :  { %947 = vmatpush.msra.mxu2 %v928_v34 }
 0x7d5   :  { %948 = vmatpush.msra.mxu2 %v927_v35  ;;  %v2056_v35 = vld [vmem:[%s2926_s6 + $0x38] sm:$0xff] }
 0x7d6   :  { %1049 = vmatpush.msrb.mxu0 %v2056_v35 }
 0x7d7   :  { %949 = vmatpush.msra.mxu2 %v926_v36  ;;  %v2055_v36 = vld [vmem:[%s2926_s6 + $0x30] sm:$0xff] }
 0x7d8   :  { %1050 = vmatpush.msrb.mxu0 %v2055_v36 }
 0x7d9   :  { %950 = vmatpush.msra.mxu2 %v925_v37  ;;  %v2054_v37 = vld [vmem:[%s2926_s6 + $0x28] sm:$0xff] }
 0x7da   :  { %1051 = vmatpush.msrb.mxu0 %v2054_v37 }
 0x7db   :  { %951 = vmatpush.msra.mxu2 %v924_v40 }
 0x822   :  { %v798_v2 = vpop.xlane.xlu2 %797 }
 0x823   :  { %v802_v41 = vmul.f32 %v798_v2, %v2379_v13 }
 0x825   :  { %v804_v42 = vsub.f32 %v2546_v30, %v802_v41  ;;  %v923_v41 = vld [vmem:[%s2929_s9 + $0x8] sm:$0xff] }
 0x826   :  { %952 = vmatpush.msra.mxu2 %v923_v41 }
 0x827   :  { %v806_v43 = vmul.f32 %v804_v42, %v804_v42 }
 0x829   :  { %v808_v44 = vsel %vm60_vm0, %v806_v43, 0.0  ;;  %v922_v43 = vld [vmem:[%s2929_s9] sm:$0xff] }
 0x82a   :  { %809 = vadd.xlane.f32.xlu1 %v808_v44  ;;  %953 = vmatpush.msra.mxu2 %v922_v43 }
 0x840   :  { %v801_v32 = vpop.xlane.xlu0 %800 }
 0x841   :  { %v803_v45 = vmul.f32 %v801_v32, %v2379_v13 }
 0x843   :  { %v805_v5 = vsub.f32 %v2552_v38, %v803_v45 }
 0x845   :  { %v807_v46 = vmul.f32 %v805_v5, %v805_v5 }
 0x847   :  { %v811_v47 = vsel %vm60_vm0, %v807_v46, 0.0 }
 0x848   :  { %812 = vadd.xlane.f32.xlu2 %v811_v47 }
 0x89d   :  { %v810_v52 = vpop.xlane.xlu1 %809 }
 0x89e   :  { %v814_v53 = vmul.f32 %v810_v52, %v2379_v13 }
 0x8a0   :  { %v816_v54 = vadd.f32 1e-05, %v814_v53 }
 0x8a2   :  { %2193 = vrsqrt.f32 %v816_v54  ;;  %vm824_vm11 = vweird.f32 %v816_v54 }
 0x8a8   :  { %v2194_v55 = vpop.eup %2193 }
 0x8a9   :  { %v819_v56 = vmul.f32 %v2194_v55, %v816_v54  ;;  %vm825_vm10 = vweird.f32 %v2194_v55 }
 0x8aa   :  { %vm826_vm12 = vmor %vm824_vm11, %vm825_vm10 }
 0x8ab   :  { %v820_v57 = vmul.f32 %v2194_v55, %v819_v56 }
 0x8ad   :  { %v821_v58 = vmul.f32 0.5, %v820_v57 }
 0x8af   :  { %v822_v60 = vsub.f32 1.5, %v821_v58 }
 0x8b1   :  { %v823_v62 = vmul.f32 %v2194_v55, %v822_v60 }
 0x8b3   :  { %v827_v1 = vsel %vm826_vm12, %v2194_v55, %v823_v62 }
 0x8b4   :  { %v838_v3 = vmul.f32 %v827_v1, %v804_v42 }
 0x8b6   :  { %v841_v4 = vmul.f32 %v840_v0, %v838_v3 }
 0x8b8   :  { %v844_v7 = vadd.f32 %v843_v59, %v841_v4 }
 0x8ba   :  { %2044 = vmatmul.msk.f32.vlgmr.msra.gmra.mxu1 %vm60_vm0, %v844_v7 }
 0x8bb   :  { %v813_v9 = vpop.xlane.xlu2 %812 }
 0x8bc   :  { %v815_v10 = vmul.f32 %v813_v9, %v2379_v13 }
 0x8be   :  { %v817_v11 = vadd.f32 1e-05, %v815_v10 }
 0x8c0   :  { %2195 = vrsqrt.f32 %v817_v11  ;;  %vm834_vm14 = vweird.f32 %v817_v11 }
 0x8c6   :  { %v2196_v12 = vpop.eup %2195 }
 0x8c7   :  { %v829_v14 = vmul.f32 %v2196_v12, %v817_v11  ;;  %vm835_vm13 = vweird.f32 %v2196_v12 }
 0x8c8   :  { %vm836_vm15 = vmor %vm834_vm14, %vm835_vm13 }
 0x8c9   :  { %v830_v15 = vmul.f32 %v2196_v12, %v829_v14 }
 0x8cb   :  { %v831_v16 = vmul.f32 0.5, %v830_v15 }
 0x8cd   :  { %v832_v61 = vsub.f32 1.5, %v831_v16 }
 0x8cf   :  { %v833_v17 = vmul.f32 %v2196_v12, %v832_v61  ;;  %v963_v61 = vperm.slane %v2404_v39, 5 }
 0x8d1   :  { %v837_v18 = vsel %vm836_vm15, %v2196_v12, %v833_v17 }
 0x8d2   :  { %v839_v19 = vmul.f32 %v837_v18, %v805_v5 }
 0x8d4   :  { %v842_v20 = vmul.f32 %v840_v0, %v839_v19 }
 0x8d6   :  { %v845_v21 = vadd.f32 %v843_v59, %v842_v20 }
 0x8d8   :  { %2045 = vmatmul.msk.f32.gmra.mxu1 %vm60_vm0, %v845_v21 }
 0x937   :  { %v874_v2 = vpop.f32.mrf.mxu1 }
 0x938   :  { %v875_v42 = vadd.f32 %v2152_v29, %v874_v2 }
 0x93a   :  { %v2046_v44 = vmul.f32 -1.702, %v875_v42 }
 0x93c   :  { %v884_v32 = vmul.f32 1.442695, %v2046_v44 }
 0x93e   :  { %2197 = vpow2.f32 %v884_v32 }
 0x944   :  { %v2198_v45 = vpop.eup %2197 }
 0x945   :  { %v888_v5 = vadd.f32 1.0, %v2198_v45  ;;  %v2664_v45 = vld [vmem:[%s2923_s3 + $0x8] sm:$0x3f] }
 0x947   :  { %2199 = vrcp.f32 %v888_v5  ;;  %v901_v49 = vand.u32 2147483648, %v888_v5  ;;  %v899_v51 = vand.u32 2147483647, %v888_v5  ;;  %vm895_vm2 = vweird.f32 %v888_v5 }
 0x949   :  { %v902_v53 = vor.u32 1.1754944e-38, %v901_v49  ;;  %vm900_vm4 = vcmp.eq.f32.partialorder %v899_v51, 8.507059e+37 }
 0x94d   :  { %v2200_v46 = vpop.eup %2199 }
 0x94e   :  { %v891_v47 = vmul.f32 %v2200_v46, %v888_v5  ;;  %vm896_vm1 = vweird.f32 %v2200_v46 }
 0x94f   :  { %vm897_vm3 = vmor %vm895_vm2, %vm896_vm1 }
 0x950   :  { %v892_v48 = vsub.f32 1.0, %v891_v47  ;;  %v1019_v47 = vperm.slane %v2664_v45, 0 }
 0x952   :  { %v893_v50 = vmul.f32 %v2200_v46, %v892_v48 }
 0x954   :  { %v894_v52 = vadd.f32 %v2200_v46, %v893_v50  ;;  %v1022_v50 = vperm.slane %v2664_v45, 1 }
 0x955   :  { %v877_v54 = vpop.f32.mrf.mxu1 }
 0x956   :  { %v898_v55 = vsel %vm897_vm3, %v2200_v46, %v894_v52  ;;  %v878_v56 = vadd.f32 %v2152_v29, %v877_v54  ;;  %v2053_v29 = vld [vmem:[%s2926_s6 + $0x20] sm:$0xff] }
 0x957   :  { %v903_v57 = vsel %vm900_vm4, %v902_v53, %v898_v55  ;;  %1052 = vmatpush.msrb.mxu0 %v2053_v29 }
 0x958   :  { %v920_v58 = vmul.f32 %v903_v57, %v875_v42  ;;  %v2047_v60 = vmul.f32 -1.702, %v878_v56 }
 0x95a   :  { %v886_v62 = vmul.f32 1.442695, %v2047_v60  ;;  %954 = vmatmul.f32.vlgmr.msra.gmra.mxu2 %v920_v58 }
 0x95c   :  { %2201 = vpow2.f32 %v886_v62 }
 0x962   :  { %v2202_v0 = vpop.eup %2201 }
 0x963   :  { %v889_v1 = vadd.f32 1.0, %v2202_v0 }
 0x965   :  { %2203 = vrcp.f32 %v889_v1  ;;  %v916_v7 = vand.u32 2147483648, %v889_v1  ;;  %v914_v10 = vand.u32 2147483647, %v889_v1  ;;  %vm910_vm6 = vweird.f32 %v889_v1 }
 0x967   :  { %v917_v12 = vor.u32 1.1754944e-38, %v916_v7  ;;  %vm915_vm9 = vcmp.eq.f32.partialorder %v914_v10, 8.507059e+37  ;;  %v2153_v7 = vld [vmem:[%s2924_s4 + $0x1] ss:$0 sm:$0xff] }
 0x96b   :  { %v2204_v3 = vpop.eup %2203 }
 0x96c   :  { %v906_v59 = vmul.f32 %v2204_v3, %v889_v1  ;;  %vm911_vm5 = vweird.f32 %v2204_v3 }
 0x96d   :  { %vm912_vm7 = vmor %vm910_vm6, %vm911_vm5 }
 0x96e   :  { %v907_v4 = vsub.f32 1.0, %v906_v59 }
 0x970   :  { %v908_v9 = vmul.f32 %v2204_v3, %v907_v4 }
 0x972   :  { %v909_v11 = vadd.f32 %v2204_v3, %v908_v9 }
 0x974   :  { %v913_v14 = vsel %vm912_vm7, %v2204_v3, %v909_v11 }
 0x975   :  { %v918_v15 = vsel %vm915_vm9, %v917_v12, %v913_v14 }
 0x976   :  { %v921_v16 = vmul.f32 %v918_v15, %v878_v56 }
 0x978   :  { %957 = vmatmul.f32.gmra.mxu2 %v921_v16 }
 0x9dd   :  { %v955_v17 = vpop.f32.mrf.mxu2 }
 0x9de   :  { %v961_v18 = vadd.f32 %v955_v17, %v2546_v30 }
 0x9e0   :  { %v2633_v19 = vadd.f32 %v963_v61, %v961_v18 }
 0x9e2   :  { %v975_v20 = vsel %vm60_vm0, %v2633_v19, 0.0 }
 0x9e3   :  { %976 = vadd.xlane.f32.xlu0 %v975_v20 }
 0x9fb   :  { %v958_v21 = vpop.f32.mrf.mxu2 }
 0x9fc   :  { %v962_v22 = vadd.f32 %v958_v21, %v2552_v38 }
 0x9fe   :  { %v2638_v23 = vadd.f32 %v963_v61, %v962_v22 }
 0xa00   :  { %v978_v24 = vsel %vm60_vm0, %v2638_v23, 0.0 }
 0xa01   :  { %979 = vadd.xlane.f32.xlu2 %v978_v24 }
 0xa56   :  { %v977_v25 = vpop.xlane.xlu0 %976 }
 0xa57   :  { %v981_v39 = vmul.f32 %v977_v25, %v2379_v13 }
 0xa59   :  { %v983_v30 = vsub.f32 %v2633_v19, %v981_v39 }
 0xa5b   :  { %v985_v26 = vmul.f32 %v983_v30, %v983_v30 }
 0xa5d   :  { %v987_v27 = vsel %vm60_vm0, %v985_v26, 0.0 }
 0xa5e   :  { %988 = vadd.xlane.f32.xlu0 %v987_v27 }
 0xa74   :  { %v980_v28 = vpop.xlane.xlu2 %979 }
 0xa75   :  { %v982_v31 = vmul.f32 %v980_v28, %v2379_v13 }
 0xa77   :  { %v984_v38 = vsub.f32 %v2638_v23, %v982_v31 }
 0xa79   :  { %v986_v33 = vmul.f32 %v984_v38, %v984_v38 }
 0xa7b   :  { %v990_v34 = vsel %vm60_vm0, %v986_v33, 0.0 }
 0xa7c   :  { %991 = vadd.xlane.f32.xlu1 %v990_v34 }
 0xad1   :  { %v989_v40 = vpop.xlane.xlu0 %988 }
 0xad2   :  { %v993_v2 = vmul.f32 %v989_v40, %v2379_v13 }
 0xad4   :  { %v995_v41 = vadd.f32 1e-05, %v993_v2 }
 0xad6   :  { %2205 = vrsqrt.f32 %v995_v41  ;;  %vm1003_vm11 = vweird.f32 %v995_v41 }
 0xadc   :  { %v2206_v42 = vpop.eup %2205 }
 0xadd   :  { %v998_v43 = vmul.f32 %v2206_v42, %v995_v41  ;;  %vm1004_vm10 = vweird.f32 %v2206_v42 }
 0xade   :  { %vm1005_vm12 = vmor %vm1003_vm11, %vm1004_vm10 }
 0xadf   :  { %v999_v44 = vmul.f32 %v2206_v42, %v998_v43 }
 0xae1   :  { %v1000_v32 = vmul.f32 0.5, %v999_v44 }
 0xae3   :  { %v1001_v5 = vsub.f32 1.5, %v1000_v32 }
 0xae5   :  { %v1002_v46 = vmul.f32 %v2206_v42, %v1001_v5 }
 0xae7   :  { %v1006_v48 = vsel %vm1005_vm12, %v2206_v42, %v1002_v46 }
 0xae8   :  { %v1017_v49 = vmul.f32 %v1006_v48, %v983_v30 }
 0xaea   :  { %v1020_v51 = vmul.f32 %v1019_v47, %v1017_v49 }
 0xaec   :  { %v1023_v52 = vadd.f32 %v1022_v50, %v1020_v51 }
 0xaee   :  { %2057 = vmatmul.msk.f32.vlgmr.msrb.gmra.mxu0 %vm60_vm0, %v1023_v52  ;;  %v2049_v52 = vld [vmem:[%s2927_s7 + $0x20] sm:$0xff] }
 0xaef   :  { %v992_v53 = vpop.xlane.xlu1 %991 }
 0xaf0   :  { %v994_v54 = vmul.f32 %v992_v53, %v2379_v13 }
 0xaf2   :  { %v996_v55 = vadd.f32 1e-05, %v994_v54 }
 0xaf4   :  { %2207 = vrsqrt.f32 %v996_v55  ;;  %vm1013_vm14 = vweird.f32 %v996_v55 }
 0xafa   :  { %v2208_v56 = vpop.eup %2207 }
 0xafb   :  { %v1008_v57 = vmul.f32 %v2208_v56, %v996_v55  ;;  %vm1014_vm13 = vweird.f32 %v2208_v56 }
 0xafc   :  { %vm1015_vm15 = vmor %vm1013_vm14, %vm1014_vm13 }
 0xafd   :  { %v1009_v58 = vmul.f32 %v2208_v56, %v1008_v57 }
 0xaff   :  { %v1010_v60 = vmul.f32 0.5, %v1009_v58 }
 0xb01   :  { %v1011_v62 = vsub.f32 1.5, %v1010_v60 }
 0xb03   :  { %v1012_v0 = vmul.f32 %v2208_v56, %v1011_v62 }
 0xb05   :  { %v1016_v1 = vsel %vm1015_vm15, %v2208_v56, %v1012_v0 }
 0xb06   :  { %v1018_v3 = vmul.f32 %v1016_v1, %v984_v38 }
 0xb08   :  { %v1021_v59 = vmul.f32 %v1019_v47, %v1018_v3 }
 0xb0a   :  { %v1024_v4 = vadd.f32 %v1022_v50, %v1021_v59 }
 0xb0c   :  { %2058 = vmatmul.msk.f32.gmra.mxu0 %vm60_vm0, %v1024_v4 }
 0xb6b   :  { %v1054_v9 = vpop.f32.mrf.mxu0 }
 0xb6c   :  { %v2674_v10 = vadd.f32 %v2153_v7, %v1054_v9  ;;  %v2050_v9 = vld [vmem:[%s2927_s7 + $0x28] sm:$0xff] }
 0xb6d   :  { %1339 = vmatpush.msrb.mxu2 %v2050_v9 }
 0xb6e   :  { %1190 = vrot.lane.b32.xlu1 %v2674_v10, %s2282_s19  ;;  %1061 = vrot.lane.b32.xlu2 %v2674_v10, %s2283_s20 }
 0xb89   :  { %v1057_v11 = vpop.f32.mrf.mxu0 }
 0xb8a   :  { %v2680_v12 = vadd.f32 %v2153_v7, %v1057_v11 }
 0xb8c   :  { %1088 = vrot.lane.b32.xlu0 %v2680_v12, %s2283_s20  ;;  %v2138_v26 = vpack.i.bf16 %v2674_v10, %v2680_v12 }
 0xb94   :  { %1188 = vrot.lane.b32.xlu0 %v2674_v10, %s2284_s21 }
 0xbc8   :  { %v1062_v14 = vpop.permute.xlu2 %1061 }
 0xbc9   :  { %2059 = vmatpush.xpose.msk.msra.mxu3 %vm155_vm8, %v1062_v14 }
 0xbcc   :  { %2060 = vmatmul.msk.f32.vlgmr.msra.gmra.mxu3 %vm155_vm8, %v2674_v10 }
 0xbe0   :  { %v1191_v16 = vpop.permute.xlu1 %1190 }
 0xbfe   :  { %v1089_v15 = vpop.permute.xlu0 %1088 }
 0xbff   :  { %2061 = vmatpush.xpose.msk.msrb.mxu1 %vm155_vm8, %v1089_v15 }
 0xc02   :  { %2062 = vmatmul.msk.f32.vlgmr.msrb.gmra.mxu1 %vm155_vm8, %v2680_v12 }
 0xc03   :  { %2065 = vmatpush.xpose.msk.msra.mxu1 %vm155_vm8, %v1191_v16 }
 0xc06   :  { %v1189_v61 = vpop.permute.xlu0 %1188 }
 0xc0a   :  { %2066 = vmatmul.msk.f32.vlgmr.msra.gmra.mxu1 %vm155_vm8, %v1189_v61 }
 0xc4f   :  { %v1084_v17 = vpop.f32.mrf.mxu3 }
 0xc50   :  { %v1085_v18 = vadd.f32 %v1084_v17, %v2440_v8 }
 0xc52   :  { %v1114_v20 = vsel %vm155_vm8, %v1085_v18, -inf }
 0xc53   :  { %1115 = vmax.xlane.f32.xlu0 %v1114_v20 }
 0xc67   :  { %1218 = vrot.lane.b32.xlu0 %v2680_v12, %s2282_s19 }
 0xc7f   :  { %v1111_v21 = vpop.f32.mrf.mxu1 }
 0xc80   :  { %v1112_v22 = vadd.f32 %v1111_v21, %v2440_v8 }
 0xc82   :  { %v1117_v24 = vsel %vm155_vm8, %v1112_v22, -inf }
 0xc83   :  { %1118 = vmax.xlane.f32.xlu2 %v1117_v24 }
 0xc87   :  { %v1213_v25 = vpop.f32.mrf.mxu1 }
 0xc88   :  { %v1214_v39 = vadd.f32 %v1213_v25, %v2440_v8 }
 0xc8a   :  { %v1244_v30 = vsel %vm155_vm8, %v1214_v39, -inf }
 0xc8b   :  { %1245 = vmax.xlane.f32.xlu1 %v1244_v30 }
 0xc9b   :  { %1266 = vrot.lane.b32.xlu2 %v2674_v10, %s2288_s24 }
 0xca4   :  { %2139 = vrot.lane.b32.xlu1 %v2138_v26, %s2286_s22 }
 0xcac   :  { %1216 = vrot.lane.b32.xlu1 %v2680_v12, %s2284_s21 }
 0xcc6   :  { %v1116_v27 = vpop.xlane.xlu0 %1115 }
 0xcc7   :  { %v1120_v28 = vsub.f32 %v1085_v18, %v1116_v27 }
 0xcc9   :  { %v1122_v31 = vmul.f32 1.442695, %v1120_v28 }
 0xccb   :  { %2209 = vpow2.f32 %v1122_v31 }
 0xcd1   :  { %v2210_v38 = vpop.eup %2209 }
 0xcd2   :  { %v1126_v33 = vsel %vm155_vm8, %v2210_v38, 0.0 }
 0xcd3   :  { %1127 = vadd.xlane.f32.xlu2 %v1126_v33 }
 0xcd9   :  { %v1219_v46 = vpop.permute.xlu0 %1218 }
 0xcf6   :  { %v1119_v34 = vpop.xlane.xlu2 %1118 }
 0xcf7   :  { %v1121_v35 = vsub.f32 %v1112_v22, %v1119_v34 }
 0xcf9   :  { %v1124_v36 = vmul.f32 1.442695, %v1121_v35 }
 0xcfb   :  { %2211 = vpow2.f32 %v1124_v36 }
 0xcfe   :  { %v1246_v37 = vpop.xlane.xlu1 %1245  ;;  %v1267_v47 = vpop.permute.xlu2 %1266 }
 0xcff   :  { %v1250_v29 = vsub.f32 %v1214_v39, %v1246_v37 }
 0xd01   :  { %v2212_v40 = vpop.eup %2211  ;;  %v1252_v2 = vmul.f32 1.442695, %v1250_v29 }
 0xd02   :  { %v1129_v41 = vsel %vm155_vm8, %v2212_v40, 0.0 }
 0xd03   :  { %2213 = vpow2.f32 %v1252_v2  ;;  %1130 = vadd.xlane.f32.xlu2 %v1129_v41 }
 0xd09   :  { %v2214_v42 = vpop.eup %2213 }
 0xd0a   :  { %v1256_v43 = vsel %vm155_vm8, %v2214_v42, 0.0 }
 0xd0b   :  { %1257 = vadd.xlane.f32.xlu0 %v1256_v43 }
 0xd16   :  { %v2140_v44 = vpop.permute.xlu1 %2139 }
 0xd17   :  { %v2142_v32 = vunpack.i.h.bf16 %v2140_v44  ;;  %v2141_v5 = vunpack.i.l.bf16 %v2140_v44 }
 0xd19   :  { %1157 = vmatpush.msra.mxu0 %v2142_v32  ;;  %1183 = vmatpush.msrb.mxu3 %v2141_v5 }
 0xd1b   :  { %2067 = vmatpush.xpose.msk.msrb.mxu0 %vm155_vm8, %v1219_v46  ;;  %1287 = vmatpush.msra.mxu3 %v1267_v47 }
 0xd1c   :  { %1376 = vrot.lane.b32.xlu2 %v2674_v10, %s2289_s25 }
 0xd1e   :  { %v1217_v51 = vpop.permute.xlu1 %1216 }
 0xd1f   :  { %1378 = vrot.lane.b32.xlu0 %v2674_v10, %s2287_s23 }
 0xd24   :  { %1406 = vrot.lane.b32.xlu2 %v2680_v12, %s2287_s23 }
 0xd2c   :  { %1539 = vrot.lane.b32.xlu2 %v2674_v10, %s2291_s29 }
 0xd46   :  { %v1128_v48 = vpop.xlane.xlu2 %1127 }
 0xd47   :  { %2215 = vrcp.f32 %v1128_v48 }
 0xd4d   :  { %v2216_v49 = vpop.eup %2215 }
 0xd4e   :  { %v1134_v50 = vmul.f32 %v2216_v49, %v2210_v38 }
 0xd50   :  { %2063 = vmatmul.msk.f32.vlgmr.msra.gmra.mxu0 %vm155_vm8, %v1134_v50 }
 0xd51   :  { %1368 = vmatpush.msra.mxu0 %v2049_v52 }
 0xd58   :  { %2068 = vmatmul.msk.f32.vlgmr.msrb.gmra.mxu0 %vm155_vm8, %v1217_v51 }
 0xd76   :  { %v1131_v53 = vpop.xlane.xlu2 %1130 }
 0xd77   :  { %2217 = vrcp.f32 %v1131_v53 }
 0xd7d   :  { %v2218_v54 = vpop.eup %2217 }
 0xd7e   :  { %v1135_v55 = vmul.f32 %v2218_v54, %v2212_v40  ;;  %v1258_v56 = vpop.xlane.xlu0 %1257  ;;  %v1377_v57 = vpop.permute.xlu2 %1376  ;;  %v2051_v54 = vld [vmem:[%s2927_s7 + $0x30] sm:$0xff] }
 0xd7f   :  { %2219 = vrcp.f32 %v1258_v56  ;;  %1527 = vmatpush.msra.mxu2 %v2051_v54  ;;  %v2094_v54 = vld [vmem:[%s2928_s8 + $0x38] sm:$0xff] }
 0xd80   :  { %2064 = vmatmul.msk.f32.vlgmr.msrb.gmra.mxu3 %vm155_vm8, %v1135_v55 }
 0xd85   :  { %v2220_v58 = vpop.eup %2219 }
 0xd86   :  { %v1264_v60 = vmul.f32 %v2220_v58, %v2214_v42  ;;  %v1407_v62 = vpop.permute.xlu2 %1406 }
 0xd88   :  { %2069 = vmatmul.msk.f32.vlgmr.msra.gmra.mxu3 %vm155_vm8, %v1264_v60 }
 0xd8e   :  { %v1540_v0 = vpop.permute.xlu2 %1539 }
 0xd8f   :  { %2083 = vmatpush.xpose.msk.msrb.mxu0 %vm155_vm8, %v1540_v0 }
 0xd91   :  { %v1379_v1 = vpop.permute.xlu0 %1378 }
 0xd92   :  { %2075 = vmatpush.xpose.msk.msrb.mxu3 %vm155_vm8, %v1379_v1 }
 0xd95   :  { %2076 = vmatmul.msk.f32.vlgmr.msrb.gmra.mxu3 %vm155_vm8, %v1377_v57 }
 0xdcd   :  { %v1159_v3 = vpop.f32.mrf.mxu0 }
 0xdce   :  { %2073 = vmatmul.msk.f32.vlgmr.msra.gmra.mxu0 %vm155_vm8, %v1159_v3 }
 0xdd5   :  { %v1241_v59 = vpop.f32.mrf.mxu0 }
 0xdd6   :  { %v1242_v4 = vadd.f32 %v1241_v59, %v2440_v8 }
 0xdd8   :  { %v1247_v7 = vsel %vm155_vm8, %v1242_v4, -inf }
 0xdd9   :  { %1248 = vmax.xlane.f32.xlu1 %v1247_v7 }
 0xdf2   :  { %1292 = vrot.lane.b32.xlu1 %v2680_v12, %s2288_s24  ;;  %s2935_s24 = smov 40  }
 0xdfa   :  { %1454 = vrot.lane.b32.xlu1 %v2674_v10, %s2290_s28 }
 0xe02   :  { %1537 = vrot.lane.b32.xlu1 %v2674_v10, %s2292_s30 }
 0xe03   :  { %v1185_v11 = vpop.f32.mrf.mxu3 }
 0xe04   :  { %2074 = vmatmul.msk.f32.gmra.mxu0 %vm155_vm8, %v1185_v11 }
 0xe0b   :  { %v1289_v14 = vpop.f32.mrf.mxu3 }
 0xe0c   :  { %2071 = vmatmul.msk.f32.vlgmr.msrb.gmra.mxu2 %vm155_vm8, %v1289_v14 }
 0xe18   :  { %v1401_v15 = vpop.f32.mrf.mxu3 }
 0xe19   :  { %v1402_v16 = vadd.f32 %v1401_v15, %v2440_v8 }
 0xe1b   :  { %v1432_v61 = vsel %vm155_vm8, %v1402_v16, -inf }
 0xe1c   :  { %1433 = vmax.xlane.f32.xlu0 %v1432_v61 }
 0xe30   :  { %1404 = vrot.lane.b32.xlu0 %v2680_v12, %s2289_s25 }
 0xe4b   :  { %v2759_v36 = vpop.f32.mrf.mxu0 }
 0xe4c   :  { %v1249_v17 = vpop.xlane.xlu1 %1248 }
 0xe4d   :  { %v1251_v18 = vsub.f32 %v1242_v4, %v1249_v17 }
 0xe4f   :  { %v1254_v20 = vmul.f32 1.442695, %v1251_v18 }
 0xe51   :  { %2221 = vpow2.f32 %v1254_v20 }
 0xe57   :  { %v2222_v21 = vpop.eup %2221 }
 0xe58   :  { %v1259_v22 = vsel %vm155_vm8, %v2222_v21, 0.0 }
 0xe59   :  { %1260 = vadd.xlane.f32.xlu2 %v1259_v22 }
 0xe64   :  { %v1293_v24 = vpop.permute.xlu1 %1292 }
 0xe65   :  { %1313 = vmatpush.msrb.mxu1 %v1293_v24 }
 0xe67   :  { %2077 = vmatpush.xpose.msk.msra.mxu1 %vm155_vm8, %v1407_v62 }
 0xe6c   :  { %v1455_v25 = vpop.permute.xlu1 %1454 }
 0xe6d   :  { %1475 = vmatpush.msra.mxu3 %v1455_v25 }
 0xe71   :  { %1565 = vrot.lane.b32.xlu2 %v2680_v12, %s2292_s30  ;;  %s2001_s30 = sshll.u32 %s2932_s12, 4  ;;  %s2002_s30 = int_to_ptr.hbm [resolvable:$true] %s2001_s30 }
 0xe74   :  { %v1538_v39 = vpop.permute.xlu1 %1537 }
 0xe75   :  { %2084 = vmatmul.msk.f32.vlgmr.msrb.gmra.mxu0 %vm155_vm8, %v1538_v39 }
 0xe81   :  { %v2761_v37 = vpop.f32.mrf.mxu0 }
 0xe8f   :  { %v1434_v30 = vpop.xlane.xlu0 %1433 }
 0xe90   :  { %v1438_v26 = vsub.f32 %v1402_v16, %v1434_v30 }
 0xe92   :  { %v1440_v27 = vmul.f32 1.442695, %v1438_v26  ;;  %v1341_v26 = vpop.f32.mrf.mxu2 }
 0xe94   :  { %2223 = vpow2.f32 %v1440_v27 }
 0xe9a   :  { %v2224_v28 = vpop.eup %2223 }
 0xe9b   :  { %v1444_v31 = vsel %vm155_vm8, %v2224_v28, 0.0 }
 0xe9c   :  { %1445 = vadd.xlane.f32.xlu0 %v1444_v31  ;;  %v1371_v31 = vadd.f32 %v2759_v36, %v1341_v26 }
 0xea2   :  { %v1405_v35 = vpop.permute.xlu0 %1404 }
 0xeb0   :  { %1567 = vrot.lane.b32.xlu0 %v2680_v12, %s2291_s29 }
 0xecc   :  { %v1261_v38 = vpop.xlane.xlu2 %1260 }
 0xecd   :  { %2225 = vrcp.f32 %v1261_v38 }
 0xed3   :  { %v2226_v33 = vpop.eup %2225 }
 0xed4   :  { %v1265_v34 = vmul.f32 %v2226_v33, %v2222_v21  ;;  %v1566_v32 = vpop.permute.xlu2 %1565 }
 0xed6   :  { %2070 = vmatmul.msk.f32.vlgmr.msrb.gmra.mxu1 %vm155_vm8, %v1265_v34 }
 0xede   :  { %2078 = vmatmul.msk.f32.vlgmr.msra.gmra.mxu1 %vm155_vm8, %v1405_v35  ;;  %v1700_v35 = vperm.slane %v2664_v45, 2 }
 0xef2   :  { %v1562_v29 = vpop.f32.mrf.mxu0 }
 0xef3   :  { %v1563_v40 = vadd.f32 %v1562_v29, %v2440_v8 }
 0xef5   :  { %v1593_v2 = vsel %vm155_vm8, %v1563_v40, -inf }
 0xef6   :  { %1594 = vmax.xlane.f32.xlu1 %v1593_v2 }
 0xf0f   :  { %v1446_v41 = vpop.xlane.xlu0 %1445 }
 0xf10   :  { %2227 = vrcp.f32 %v1446_v41 }
 0xf16   :  { %v2228_v42 = vpop.eup %2227 }
 0xf17   :  { %v1452_v43 = vmul.f32 %v2228_v42, %v2224_v28 }
 0xf19   :  { %2079 = vmatmul.msk.f32.vlgmr.msra.gmra.mxu3 %vm155_vm8, %v1452_v43 }
 0xf22   :  { %v1568_v44 = vpop.permute.xlu0 %1567 }
 0xf23   :  { %2085 = vmatpush.xpose.msk.msrb.mxu3 %vm155_vm8, %v1568_v44 }
 0xf26   :  { %2086 = vmatmul.msk.f32.vlgmr.msrb.gmra.mxu3 %vm155_vm8, %v1566_v32 }
 0xf53   :  { %v1315_v5 = vpop.f32.mrf.mxu1 }
 0xf54   :  { %2072 = vmatmul.msk.f32.gmra.mxu2 %vm155_vm8, %v1315_v5 }
 0xf5b   :  { %v1429_v46 = vpop.f32.mrf.mxu1 }
 0xf5c   :  { %v1430_v47 = vadd.f32 %v1429_v46, %v2440_v8 }
 0xf5e   :  { %v1435_v48 = vsel %vm155_vm8, %v1430_v47, -inf }
 0xf5f   :  { %1436 = vmax.xlane.f32.xlu0 %v1435_v48 }
 0xf69   :  { %v1595_v49 = vpop.xlane.xlu1 %1594 }
 0xf6a   :  { %v1599_v50 = vsub.f32 %v1563_v40, %v1595_v49 }
 0xf6c   :  { %v1601_v51 = vmul.f32 1.442695, %v1599_v50 }
 0xf6e   :  { %2229 = vpow2.f32 %v1601_v51 }
 0xf74   :  { %v2230_v52 = vpop.eup %2229 }
 0xf75   :  { %v1605_v53 = vsel %vm155_vm8, %v2230_v52, 0.0 }
 0xf76   :  { %1606 = vadd.xlane.f32.xlu1 %v1605_v53 }
 0xf8f   :  { %1615 = vrot.lane.b32.xlu1 %v2674_v10, %s2935_s24 }
 0xf9c   :  { %v1477_v55 = vpop.f32.mrf.mxu3 }
 0xf9d   :  { %2081 = vmatmul.msk.f32.vlgmr.msra.gmra.mxu2 %vm155_vm8, %v1477_v55  ;;  %v2093_v55 = vld [vmem:[%s2928_s8 + $0x30] sm:$0xff] }
 0xfa9   :  { %v1590_v56 = vpop.f32.mrf.mxu3 }
 0xfaa   :  { %v1591_v57 = vadd.f32 %v1590_v56, %v2440_v8  ;;  %v2092_v56 = vld [vmem:[%s2928_s8 + $0x28] sm:$0xff] }
 0xfac   :  { %v1596_v58 = vsel %vm155_vm8, %v1591_v57, -inf }
 0xfad   :  { %1597 = vmax.xlane.f32.xlu2 %v1596_v58 }
 0xfc5   :  { %1480 = vrot.lane.b32.xlu2 %v2680_v12, %s2290_s28 }
 0xfd2   :  { %v1437_v60 = vpop.xlane.xlu0 %1436 }
 0xfd3   :  { %v1439_v62 = vsub.f32 %v1430_v47, %v1437_v60 }
 0xfd5   :  { %v1442_v0 = vmul.f32 1.442695, %v1439_v62 }
 0xfd7   :  { %2231 = vpow2.f32 %v1442_v0  ;;  %v1344_v27 = vpop.f32.mrf.mxu2 }
 0xfd8   :  { %v1374_v42 = vadd.f32 %v2761_v37, %v1344_v27 }
 0xfdd   :  { %v2232_v1 = vpop.eup %2231 }
 0xfde   :  { %v1447_v3 = vsel %vm155_vm8, %v2232_v1, 0.0 }
 0xfdf   :  { %1448 = vadd.xlane.f32.xlu0 %v1447_v3 }
 0xfe9   :  { %v1607_v59 = vpop.xlane.xlu1 %1606 }
0x1001   :  { %v1616_v9 = vpop.permute.xlu1 %1615 }
0x1020   :  { %v1598_v10 = vpop.xlane.xlu2 %1597  ;;  %v1529_v28 = vpop.f32.mrf.mxu2 }
0x1021   :  { %v1600_v4 = vsub.f32 %v1591_v57, %v1598_v10  ;;  %v1535_v38 = vadd.f32 %v1529_v28, %v1371_v31  ;;  %v2091_v57 = vld [vmem:[%s2928_s8 + $0x20] sm:$0xff]  ;;  %v2113_v31 = vld [vmem:[%s2929_s9 + $0xf0] sm:$0xff] }
0x1023   :  { %v1603_v7 = vmul.f32 1.442695, %v1600_v4 }
0x1025   :  { %2233 = vpow2.f32 %v1603_v7  ;;  %v1747_v7 = vperm.slane %v2664_v45, 3 }
0x1028   :  { %v1481_v8 = vpop.permute.xlu2 %1480 }
0x1029   :  { %1501 = vmatpush.msrb.mxu1 %v1481_v8 }
0x102b   :  { %1636 = vmatpush.msra.mxu1 %v1616_v9  ;;  %v2234_v11 = vpop.eup %2233 }
0x102c   :  { %v1608_v14 = vsel %vm155_vm8, %v2234_v11, 0.0 }
0x102d   :  { %1609 = vadd.xlane.f32.xlu0 %v1608_v14 }
0x1041   :  { %1641 = vrot.lane.b32.xlu0 %v2680_v12, %s2935_s24  ;;  %v2052_v12 = vld [vmem:[%s2927_s7 + $0x38] sm:$0xff] }
0x1042   :  { %1688 = vmatpush.msra.mxu3 %v2052_v12 }
0x1052   :  { %v1449_v15 = vpop.xlane.xlu0 %1448 }
0x1053   :  { %2235 = vrcp.f32 %v1449_v15 }
0x1054   :  { %2237 = vrcp.f32 %v1607_v59 }
0x1059   :  { %v2236_v16 = vpop.eup %2235 }
0x105a   :  { %v1453_v61 = vmul.f32 %v2236_v16, %v2232_v1  ;;  %v2238_v17 = vpop.eup %2237  ;;  %v2294_v16 = vmov 0  }
0x105b   :  { %v1613_v18 = vmul.f32 %v2238_v17, %v2230_v52  ;;  %2143 = vset.pattern.permute.xlu0 %v2294_v16 }
0x105c   :  { %2080 = vmatmul.msk.f32.vlgmr.msrb.gmra.mxu1 %vm155_vm8, %v1453_v61  ;;  %v1875_v61 = vld [vmem:[%s2920_s0] sm:$0x3] }
0x105d   :  { %1777 = vmatpush.msrb.mxu1 %v2094_v54 }
0x105f   :  { %1778 = vmatpush.msrb.mxu1 %v2093_v55 }
0x1061   :  { %1779 = vmatpush.msrb.mxu1 %v2092_v56 }
0x1063   :  { %1780 = vmatpush.msrb.mxu1 %v2091_v57 }
0x1064   :  { %2087 = vmatmul.msk.f32.vlgmr.msra.gmra.mxu1 %vm155_vm8, %v1613_v18 }
0x10a0   :  { %v1610_v20 = vpop.xlane.xlu0 %1609 }
0x10a1   :  { %2239 = vrcp.f32 %v1610_v20 }
0x10a7   :  { %v2240_v21 = vpop.eup %2239 }
0x10a8   :  { %v1614_v22 = vmul.f32 %v2240_v21, %v2234_v11  ;;  %v1750_v11 = vperm.slane %v2664_v45, 4 }
0x10b3   :  { %v1642_v24 = vpop.permute.xlu0 %1641 }
0x10b4   :  { %1662 = vmatpush.msra.mxu0 %v1642_v24 }
0x10b5   :  { %2088 = vmatmul.msk.f32.vlgmr.msra.gmra.mxu0 %vm155_vm8, %v1614_v22 }
0x10d9   :  { %v1503_v25 = vpop.f32.mrf.mxu1 }
0x10da   :  { %2082 = vmatmul.msk.f32.gmra.mxu2 %vm155_vm8, %v1503_v25 }
0x10e1   :  { %v1638_v39 = vpop.f32.mrf.mxu1 }
0x10e2   :  { %2089 = vmatmul.msk.f32.vlgmr.msra.gmra.mxu3 %vm155_vm8, %v1638_v39 }
0x1132   :  { %v1664_v30 = vpop.f32.mrf.mxu0 }
0x1133   :  { %2090 = vmatmul.msk.f32.gmra.mxu3 %vm155_vm8, %v1664_v30 }
0x115d   :  { %v1532_v41 = vpop.f32.mrf.mxu2 }
0x115e   :  { %v1536_v43 = vadd.f32 %v1532_v41, %v1374_v42  ;;  %v2106_v41 = vld [vmem:[%s2929_s9 + $0xb8] sm:$0xff]  ;;  %v2105_v42 = vld [vmem:[%s2929_s9 + $0xb0] sm:$0xff] }
0x1165   :  { %v1690_v33 = vpop.f32.mrf.mxu3 }
0x1166   :  { %v1696_v34 = vadd.f32 %v1690_v33, %v1535_v38  ;;  %v2112_v38 = vld [vmem:[%s2929_s9 + $0xe8] sm:$0xff]  ;;  %v2111_v33 = vld [vmem:[%s2929_s9 + $0xe0] sm:$0xff] }
0x1168   :  { %v1698_v29 = vadd.f32 %v1696_v34, %v2633_v19  ;;  %v2110_v34 = vld [vmem:[%s2929_s9 + $0xd8] sm:$0xff] }
0x116a   :  { %v2798_v40 = vadd.f32 %v1700_v35, %v1698_v29  ;;  %v2108_v29 = vld [vmem:[%s2929_s9 + $0xc8] sm:$0xff] }
0x116c   :  { %v1703_v2 = vsel %vm60_vm0, %v2798_v40, 0.0 }
0x116d   :  { %1704 = vadd.xlane.f32.xlu2 %v1703_v2  ;;  %v2107_v2 = vld [vmem:[%s2929_s9 + $0xc0] sm:$0xff] }
0x11b6   :  { %v1693_v44 = vpop.f32.mrf.mxu3 }
0x11b7   :  { %v1697_v32 = vadd.f32 %v1693_v44, %v1536_v43  ;;  %v2104_v43 = vld [vmem:[%s2929_s9 + $0xa8] sm:$0xff]  ;;  %v2103_v44 = vld [vmem:[%s2929_s9 + $0xa0] sm:$0xff] }
0x11b9   :  { %v1699_v36 = vadd.f32 %v1697_v32, %v2638_v23  ;;  %v2102_v32 = vld [vmem:[%s2929_s9 + $0x98] sm:$0xff] }
0x11bb   :  { %v2804_v5 = vadd.f32 %v1700_v35, %v1699_v36  ;;  %v2109_v35 = vld [vmem:[%s2929_s9 + $0xd0] sm:$0xff]  ;;  %v2154_v36 = vld [vmem:[%s2925_s5 + $0x1] ss:$0 sm:$0xff] }
0x11bd   :  { %v1706_v46 = vsel %vm60_vm0, %v2804_v5, 0.0 }
0x11be   :  { %1707 = vadd.xlane.f32.xlu0 %v1706_v46  ;;  %v2101_v46 = vld [vmem:[%s2929_s9 + $0x90] sm:$0xff] }
0x11d2   :  { %1877 = vperm.xlu0 %2143, %v1875_v61  }
0x11da   :  { %2150 = vset.pattern.permute.xlu0 %v2425_v63  ;;  %v2114_v63 = vld [vmem:[%s2929_s9 + $0xf8] sm:$0xff] }
0x11db   :  { %1847 = vmatpush.msrb.mxu2 %v2114_v63 }
0x11dd   :  { %1848 = vmatpush.msrb.mxu2 %v2113_v31 }
0x11df   :  { %1849 = vmatpush.msrb.mxu2 %v2112_v38 }
0x11e0   :  { %v1705_v19 = vpop.xlane.xlu2 %1704 }
0x11e1   :  { %v1709_v47 = vmul.f32 %v1705_v19, %v2379_v13  ;;  %1850 = vmatpush.msrb.mxu2 %v2111_v33 }
0x11e3   :  { %v1711_v48 = vsub.f32 %v2798_v40, %v1709_v47  ;;  %1851 = vmatpush.msrb.mxu2 %v2110_v34  ;;  %v2100_v47 = vld [vmem:[%s2929_s9 + $0x88] sm:$0xff] }
0x11e5   :  { %v1713_v49 = vmul.f32 %v1711_v48, %v1711_v48  ;;  %1852 = vmatpush.msrb.mxu2 %v2109_v35 }
0x11e7   :  { %v1715_v50 = vsel %vm60_vm0, %v1713_v49, 0.0  ;;  %1853 = vmatpush.msrb.mxu2 %v2108_v29  ;;  %v2099_v49 = vld [vmem:[%s2929_s9 + $0x80] sm:$0xff] }
0x11e8   :  { %1716 = vadd.xlane.f32.xlu1 %v1715_v50 }
0x11e9   :  { %1854 = vmatpush.msrb.mxu2 %v2107_v2 }
0x11eb   :  { %1855 = vmatpush.msrb.mxu2 %v2106_v41 }
0x11ed   :  { %1856 = vmatpush.msrb.mxu2 %v2105_v42 }
0x11ef   :  { %1857 = vmatpush.msrb.mxu2 %v2104_v43 }
0x11f1   :  { %1858 = vmatpush.msrb.mxu2 %v2103_v44 }
0x11f3   :  { %1859 = vmatpush.msrb.mxu2 %v2102_v32 }
0x11f5   :  { %1860 = vmatpush.msrb.mxu2 %v2101_v46 }
0x11f7   :  { %1861 = vmatpush.msrb.mxu2 %v2100_v47 }
0x11f9   :  { %1862 = vmatpush.msrb.mxu2 %v2099_v49 }
0x1231   :  { %v1708_v37 = vpop.xlane.xlu0 %1707 }
0x1232   :  { %v1710_v51 = vmul.f32 %v1708_v37, %v2379_v13 }
0x1234   :  { %v1712_v23 = vsub.f32 %v2804_v5, %v1710_v51 }
0x1236   :  { %v1714_v52 = vmul.f32 %v1712_v23, %v1712_v23 }
0x1238   :  { %v1718_v53 = vsel %vm60_vm0, %v1714_v52, 0.0 }
0x1239   :  { %1719 = vadd.xlane.f32.xlu2 %v1718_v53  ;;  %v2295_v53 = vmov 0.0  }
0x1244   :  { %v1878_v52 = vpop.permute.xlu0 %1877 }
0x1245   :  { %vm1879_vm6 = vcmp.eq.s32.totalorder %v2436_v6, %v1878_v52 }
0x1246   :  { %v2115_v54 = vsel %vm1879_vm6, 1.0, %v2295_v53 }
0x1247   :  { %v1882_v55 = vperm.slane %v2115_v54, 0  ;;  %v1889_v56 = vperm.slane %v2115_v54, 1 }
0x1249   :  { %v2145_v57 = vpack.i.bf16 %v1889_v56, %v1882_v55 }
0x124b   :  { %2146 = vperm.xlu1 %2144, %v2145_v57  }
0x125b   :  { %v1717_v58 = vpop.xlane.xlu1 %1716 }
0x125c   :  { %v1721_v60 = vmul.f32 %v1717_v58, %v2379_v13 }
0x125e   :  { %v1723_v62 = vadd.f32 1e-05, %v1721_v60 }
0x1260   :  { %2241 = vrsqrt.f32 %v1723_v62  ;;  %vm1731_vm1 = vweird.f32 %v1723_v62 }
0x1266   :  { %v2242_v0 = vpop.eup %2241 }
0x1267   :  { %v1726_v1 = vmul.f32 %v2242_v0, %v1723_v62  ;;  %vm1732_vm8 = vweird.f32 %v2242_v0 }
0x1268   :  { %vm1733_vm2 = vmor %vm1731_vm1, %vm1732_vm8  ;;  %vm1915_vm8 = vcmask 1041409   ;;  %vm1918_vm1 = vcmask 254976  }
0x1269   :  { %v1727_v3 = vmul.f32 %v2242_v0, %v1726_v1 }
0x126b   :  { %v1728_v10 = vmul.f32 0.5, %v1727_v3 }
0x126d   :  { %v1729_v59 = vsub.f32 1.5, %v1728_v10 }
0x126f   :  { %v1730_v4 = vmul.f32 %v2242_v0, %v1729_v59 }
0x1271   :  { %v1734_v8 = vsel %vm1733_vm2, %v2242_v0, %v1730_v4 }
0x1272   :  { %v1745_v9 = vmul.f32 %v1734_v8, %v1711_v48 }
0x1274   :  { %v1748_v14 = vmul.f32 %v1747_v7, %v1745_v9 }
0x1276   :  { %v1751_v15 = vadd.f32 %v1750_v11, %v1748_v14 }
0x1278   :  { %2095 = vmatmul.msk.f32.vlgmr.msrb.gmra.mxu1 %vm60_vm0, %v1751_v15 }
0x12ac   :  { %v1720_v17 = vpop.xlane.xlu2 %1719 }
0x12ad   :  { %v1722_v18 = vmul.f32 %v1720_v17, %v2379_v13 }
0x12af   :  { %v1724_v20 = vadd.f32 1e-05, %v1722_v18 }
0x12b1   :  { %2243 = vrsqrt.f32 %v1724_v20  ;;  %vm1741_vm4 = vweird.f32 %v1724_v20 }
0x12b7   :  { %v2244_v21 = vpop.eup %2243 }
0x12b8   :  { %v1736_v22 = vmul.f32 %v2244_v21, %v1724_v20  ;;  %vm1742_vm3 = vweird.f32 %v2244_v21 }
0x12b9   :  { %vm1743_vm5 = vmor %vm1741_vm4, %vm1742_vm3 }
0x12ba   :  { %v1737_v24 = vmul.f32 %v2244_v21, %v1736_v22 }
0x12bc   :  { %v1738_v12 = vmul.f32 0.5, %v1737_v24 }
0x12bd   :  { %v2147_v63 = vpop.permute.xlu1 %2146 }
0x12be   :  { %v1739_v25 = vsub.f32 1.5, %v1738_v12  ;;  %v2148_v38 = vunpack.i.l.bf16 %v2147_v63  ;;  %v2149_v2 = vunpack.i.h.bf16 %v2147_v63 }
0x12c0   :  { %v1740_v39 = vmul.f32 %v2244_v21, %v1739_v25 }
0x12c2   :  { %v1744_v30 = vsel %vm1743_vm5, %v2244_v21, %v1740_v39 }
0x12c3   :  { %v1746_v26 = vmul.f32 %v1744_v30, %v1712_v23 }
0x12c5   :  { %v1749_v27 = vmul.f32 %v1747_v7, %v1746_v26 }
0x12c7   :  { %v1752_v28 = vadd.f32 %v1750_v11, %v1749_v27 }
0x12c9   :  { %2096 = vmatmul.msk.f32.gmra.mxu1 %vm60_vm0, %v1752_v28  ;;  %v1872_v28 = vperm.slane %v2664_v45, 5 }
0x12f5   :  { %v1782_v19 = vpop.f32.mrf.mxu1 }
0x12f6   :  { %v1783_v48 = vadd.f32 %v2154_v36, %v1782_v19 }
0x12f8   :  { %v2097_v50 = vmul.f32 -1.702, %v1783_v48 }
0x12fa   :  { %v1792_v37 = vmul.f32 1.442695, %v2097_v50 }
0x12fc   :  { %2245 = vpow2.f32 %v1792_v37 }
0x1302   :  { %v2246_v51 = vpop.eup %2245 }
0x1303   :  { %v1796_v23 = vadd.f32 1.0, %v2246_v51 }
0x1305   :  { %2247 = vrcp.f32 %v1796_v23  ;;  %v1809_v0 = vand.u32 2147483648, %v1796_v23  ;;  %v1807_v3 = vand.u32 2147483647, %v1796_v23  ;;  %vm1803_vm9 = vweird.f32 %v1796_v23 }
0x1307   :  { %v1810_v59 = vor.u32 1.1754944e-38, %v1809_v0  ;;  %vm1808_vm11 = vcmp.eq.f32.partialorder %v1807_v3, 8.507059e+37  ;;  %v1966_v0 = vld [vmem:[%s2931_s11 + $0x18] sm:$0xff]  ;;  %v1964_v3 = vld [vmem:[%s2931_s11 + $0x8] sm:$0xff] }
0x1308   :  { %1985 = vmatpush.msrb.mxu0 %v1966_v0 }
0x130b   :  { %v2248_v58 = vpop.eup %2247 }
0x130c   :  { %v1799_v60 = vmul.f32 %v2248_v58, %v1796_v23  ;;  %vm1804_vm7 = vweird.f32 %v2248_v58 }
0x130d   :  { %vm1805_vm10 = vmor %vm1803_vm9, %vm1804_vm7 }
0x130e   :  { %v1800_v62 = vsub.f32 1.0, %v1799_v60 }
0x1310   :  { %v1801_v1 = vmul.f32 %v2248_v58, %v1800_v62 }
0x1312   :  { %v1802_v10 = vadd.f32 %v2248_v58, %v1801_v1  ;;  %v1965_v1 = vld [vmem:[%s2931_s11 + $0x10] sm:$0xff] }
0x1313   :  { %1986 = vmatpush.msrb.mxu0 %v1965_v1 }
0x1314   :  { %v1806_v4 = vsel %vm1805_vm10, %v2248_v58, %v1802_v10  ;;  %v1963_v10 = vld [vmem:[%s2931_s11] sm:$0xff]  ;;  %s2296_s11 = smov [#allocation2]  }
0x1315   :  { %v1811_v6 = vsel %vm1808_vm11, %v1810_v59, %v1806_v4  ;;  %1987 = vmatpush.msrb.mxu0 %v1964_v3 }
0x1316   :  { %v1828_v7 = vmul.f32 %v1811_v6, %v1783_v48 }
0x1317   :  { %1988 = vmatpush.msrb.mxu0 %v1963_v10 }
0x1318   :  { %1863 = vmatmul.f32.vlgmr.msrb.gmra.mxu2 %v1828_v7 }
0x1346   :  { %v1785_v8 = vpop.f32.mrf.mxu1 }
0x1347   :  { %v1786_v9 = vadd.f32 %v2154_v36, %v1785_v8 }
0x1349   :  { %v2098_v11 = vmul.f32 -1.702, %v1786_v9 }
0x134b   :  { %v1794_v14 = vmul.f32 1.442695, %v2098_v11 }
0x134d   :  { %2249 = vpow2.f32 %v1794_v14 }
0x1353   :  { %v2250_v15 = vpop.eup %2249 }
0x1354   :  { %v1797_v16 = vadd.f32 1.0, %v2250_v15  ;;  %v1912_v15 = vld [vmem:[%s2930_s10] sm:$0x3]  ;;  %s1999_s10 = sshll.u32 %s2296_s11, 4  ;;  %s2000_s10 = int_to_ptr.vmem [resolvable:$true] %s1999_s10 }
0x1356   :  { %2251 = vrcp.f32 %v1797_v16  ;;  %v1824_v20 = vand.u32 2147483648, %v1797_v16  ;;  %v1822_v22 = vand.u32 2147483647, %v1797_v16  ;;  %vm1818_vm13 = vweird.f32 %v1797_v16 }
0x1358   :  { %v1825_v12 = vor.u32 1.1754944e-38, %v1824_v20  ;;  %vm1823_vm15 = vcmp.eq.f32.partialorder %v1822_v22, 8.507059e+37 }
0x135c   :  { %v2252_v61 = vpop.eup %2251 }
0x135d   :  { %v1814_v17 = vmul.f32 %v2252_v61, %v1797_v16  ;;  %vm1819_vm12 = vweird.f32 %v2252_v61 }
0x135e   :  { %vm1820_vm14 = vmor %vm1818_vm13, %vm1819_vm12 }
0x135f   :  { %v1815_v18 = vsub.f32 1.0, %v1814_v17  ;;  %v1957_v17 = vperm.slane %v1912_v15, 0 }
0x1361   :  { %v1816_v21 = vmul.f32 %v2252_v61, %v1815_v18 }
0x1363   :  { %v1817_v24 = vadd.f32 %v2252_v61, %v1816_v21 }
0x1365   :  { %v1821_v25 = vsel %vm1820_vm14, %v2252_v61, %v1817_v24  ;;  %v1960_v24 = vperm.slane %v1912_v15, 1 }
0x1366   :  { %v1826_v39 = vsel %vm1823_vm15, %v1825_v12, %v1821_v25 }
0x1367   :  { %v1829_v30 = vmul.f32 %v1826_v39, %v1786_v9 }
0x1369   :  { %1866 = vmatmul.f32.gmra.mxu2 %v1829_v30 }
0x139b   :  { %v1864_v26 = vpop.f32.mrf.mxu2 }
0x139c   :  { %v1870_v27 = vadd.f32 %v1864_v26, %v2798_v40 }
0x139e   :  { %v1873_v31 = vadd.f32 %v1872_v28, %v1870_v27 }
0x13a0   :  { %v1896_v33 = vmul.f32 %v2148_v38, %v1873_v31 }
0x13a2   :  { %v1898_v34 = vsel %vm60_vm0, %v1896_v33, 0.0 }
0x13a3   :  { %v1899_v35 = vrot.slane %v1898_v34, 4 }
0x13a5   :  { %v1900_v42 = vadd.f32 %v1899_v35, %v1898_v34 }
0x13a7   :  { %v1901_v32 = vrot.slane %v1900_v42, 2 }
0x13a9   :  { %v1902_v46 = vadd.f32 %v1901_v32, %v1900_v42 }
0x13ab   :  { %v1903_v47 = vrot.slane %v1902_v46, 1 }
0x13ad   :  { %v1904_v50 = vadd.f32 %v1903_v47, %v1902_v46 }
0x13ec   :  { %v1867_v29 = vpop.f32.mrf.mxu2 }
0x13ed   :  { %v1871_v41 = vadd.f32 %v1867_v29, %v2804_v5 }
0x13ef   :  { %v1874_v43 = vadd.f32 %v1872_v28, %v1871_v41 }
0x13f1   :  { %v1897_v44 = vmul.f32 %v2149_v2, %v1874_v43 }
0x13f3   :  { %v1905_v36 = vsel %vm60_vm0, %v1897_v44, 0.0 }
0x13f4   :  { %v1906_v40 = vrot.slane %v1905_v36, 4 }
0x13f6   :  { %v1907_v45 = vadd.f32 %v1906_v40, %v1905_v36 }
0x13f8   :  { %v1908_v19 = vrot.slane %v1907_v45, 2 }
0x13fa   :  { %v1909_v48 = vadd.f32 %v1908_v19, %v1907_v45 }
0x13fc   :  { %v1910_v49 = vrot.slane %v1909_v48, 1 }
0x13fe   :  { %v1911_v37 = vadd.f32 %v1910_v49, %v1909_v48 }
0x1400   :  { %v1916_v51 = vsel %vm1915_vm8, %v1911_v37, %v1904_v50 }
0x1401   :  { %v1919_v5 = vsel %vm1918_vm1, %v1916_v51, 0.0 }
0x1402   :  { %1920 = vadd.xlane.f32.xlu2 %v1919_v5 }
0x1475   :  { %v1921_v23 = vpop.xlane.xlu2 %1920 }
0x1476   :  { %v1922_v52 = vmul.f32 %v1921_v23, %v2379_v13 }
0x1478   :  { %v1924_v53 = vrot.slane %v1922_v52, 1  ;;  %v1927_v54 = vsub.f32 %v1904_v50, %v1922_v52 }
0x147a   :  { %v1928_v55 = vsub.f32 %v1911_v37, %v1924_v53  ;;  %v1929_v57 = vmul.f32 %v1927_v54, %v1927_v54 }
0x147c   :  { %v1930_v56 = vmul.f32 %v1928_v55, %v1928_v55 }
0x147e   :  { %v1933_v58 = vrot.slane %v1930_v56, 7 }
0x1480   :  { %v1934_v60 = vsel %vm1915_vm8, %v1933_v58, %v1929_v57 }
0x1481   :  { %v1936_v62 = vsel %vm1918_vm1, %v1934_v60, 0.0 }
0x1482   :  { %1937 = vadd.xlane.f32.xlu2 %v1936_v62 }
0x14f5   :  { %v1938_v59 = vpop.xlane.xlu2 %1937 }
0x14f6   :  { %v1939_v4 = vmul.f32 %v1938_v59, %v2379_v13 }
0x14f8   :  { %v1940_v6 = vadd.f32 1e-05, %v1939_v4 }
0x14fa   :  { %2253 = vrsqrt.f32 %v1940_v6  ;;  %vm1947_vm3 = vweird.f32 %v1940_v6 }
0x1500   :  { %v2254_v7 = vpop.eup %2253 }
0x1501   :  { %v1942_v8 = vmul.f32 %v2254_v7, %v1940_v6  ;;  %vm1948_vm2 = vweird.f32 %v2254_v7 }
0x1502   :  { %vm1949_vm4 = vmor %vm1947_vm3, %vm1948_vm2 }
0x1503   :  { %v1943_v9 = vmul.f32 %v2254_v7, %v1942_v8 }
0x1505   :  { %v1944_v11 = vmul.f32 0.5, %v1943_v9 }
0x1507   :  { %v1945_v14 = vsub.f32 1.5, %v1944_v11 }
0x1509   :  { %v1946_v16 = vmul.f32 %v2254_v7, %v1945_v14 }
0x150b   :  { %v1950_v61 = vsel %vm1949_vm4, %v2254_v7, %v1946_v16 }
0x150c   :  { %v1952_v18 = vrot.slane %v1950_v61, 1  ;;  %v1955_v20 = vmul.f32 %v1950_v61, %v1927_v54 }
0x150e   :  { %v1956_v13 = vmul.f32 %v1952_v18, %v1928_v55  ;;  %v1958_v21 = vmul.f32 %v1957_v17, %v1955_v20 }
0x1510   :  { %v1959_v22 = vmul.f32 %v1957_v17, %v1956_v13  ;;  %v1961_v25 = vadd.f32 %v1960_v24, %v1958_v21 }
0x1512   :  { %v1962_v12 = vadd.f32 %v1960_v24, %v1959_v22 }
0x1514   :  { %v1969_v39 = vrot.slane %v1962_v12, 7 }
0x1516   :  { %v1970_v30 = vsel %vm1915_vm8, %v1969_v39, %v1961_v25 }
0x1517   :  { %2116 = vmatmul.msk.f32.vlgmr.msrb.gmra.mxu0 %vm60_vm0, %v1970_v30 }
0x1594   :  { %v1990_v26 = vpop.f32.mrf.mxu0 }
0x1595   :  { %1993 = vst.msk [vmem:[#allocation2] sm:$0x3] %vm1918_vm1, %v1990_v26 }
0x1596   :  { %2004 = dma.vmem_to_hbm [thread:$0]  %s2000_s10, 32, %s2002_s30, [#allocation3]  }
0x1597   :  { %2279 = dma.done.wait [#allocation3], 32  }
0x1598   :  { %2280 = vsyncadd [#allocation3], 4294967264 }
0x1599   :  { %2009 = vsyncpa [#allocation3], 1 }

</bundles_post_ra>
